<compile_context>
chip_gen: v7x
topology: tpu7x:2x2x1
jax: 0.10.0
libtpu: 0.0.40
codegen_flags: <defaults>
</compile_context>

<pallas_src>
import jax
import jax.numpy as jnp
from jax.experimental import pallas as pl
from jax.experimental.pallas import tpu as pltpu

LN_EPS = 1e-5


def msa_transition_kernel(m_ref, gamma_ref, beta_ref, w1_ref, b1_ref,
                          w2_ref, b2_ref, o_ref):
    """One row tile: LayerNorm -> Linear -> ReLU -> Linear."""
    x = m_ref[...].astype(jnp.float32)                          # [tm, c_m]

    # LayerNorm over the channel (last) dim.
    mu = jnp.mean(x, axis=-1, keepdims=True)
    xc = x - mu
    var = jnp.mean(xc * xc, axis=-1, keepdims=True)
    xn = xc * jax.lax.rsqrt(var + LN_EPS)
    xn = xn * gamma_ref[...].astype(jnp.float32) + beta_ref[...].astype(jnp.float32)

    # Linear 1.  MXU inputs in the weights' dtype (bf16 by default), f32 accum.
    h = jnp.dot(xn.astype(w1_ref.dtype), w1_ref[...],
                preferred_element_type=jnp.float32)              # [tm, hidden] f32
    # Fused bias + ReLU epilogue + bf16 staging cast for the second matmul.
    h = jnp.maximum(h + b1_ref[...].astype(jnp.float32), 0.0).astype(w2_ref.dtype)

    # Linear 2.
    y = jnp.dot(h, w2_ref[...], preferred_element_type=jnp.float32)
    y = y + b2_ref[...].astype(jnp.float32)                      # [tm, c_m]

    o_ref[...] = y.astype(o_ref.dtype)


def _round_up(v, k):
    return (v + k - 1) // k * k


def _vmem_limit_and_tile_cap():
    """Per-generation VMEM limit and max row-tile (v7x has half the VMEM of v5e/v6e)."""
    try:
        cap = int(pltpu.get_tpu_info().vmem_capacity_bytes)
    except Exception:
        cap = 64 * 1024 * 1024  # conservative fallback
    if cap >= 100 * 1024 * 1024:          # v5e / v6e: 128 MiB physical VMEM
        return 96 * 1024 * 1024, 4096
    return 56 * 1024 * 1024, 2048         # v7x: 64 MiB physical, leave headroom


def _pick_tile_m(M, c_m, hidden, in_bytes, out_bytes, w_bytes,
                 budget_bytes, max_tile, single_buffer_consts):
    """Largest row tile (multiple of 8) fitting the VMEM budget, then capped so
    the parallel grid keeps a few steps for the 2-TensorCore v7x megacore."""
    m_cap = _round_up(max(M, 8), 8)

    def vmem_bytes(tm):
        io = 2 * tm * c_m * in_bytes + 2 * tm * c_m * out_bytes   # double-buffered I/O tiles
        const_factor = 1 if single_buffer_consts else 2
        wbuf = const_factor * (2 * c_m * hidden * w_bytes + (3 * c_m + hidden) * 4)
        ln_tmp = 3 * tm * c_m * 4            # x, xc, xn in f32
        stage = tm * c_m * w_bytes           # xn staged for the MXU
        hbuf = tm * hidden * (4 + w_bytes)   # f32 matmul-1 result + staged ReLU output
        ybuf = tm * c_m * 4
        return io + wbuf + ln_tmp + stage + hbuf + ybuf

    tile = _round_up(min(max_tile, m_cap), 8)
    while tile > 128 and vmem_bytes(tile) > budget_bytes:
        tile = max(8, _round_up(tile // 2, 8))
    # Keep >= ~4 grid steps so both v7x TensorCores get work (no effect once
    # M >> tile); the row axis is marked "parallel".
    tile = min(tile, max(8, _round_up(pl.cdiv(M, 4), 8)))
    return max(8, tile)


def _build_and_run(x, gamma, beta, w1c, b1, w2c, b2, *, tile_m, c_m, hidden,
                   m_pad, out_dtype, vmem_limit_bytes, cost_estimate,
                   single_buffer_consts):
    grid = (m_pad // tile_m,)
    row_spec = pl.BlockSpec((tile_m, c_m), lambda i: (i, 0))

    if single_buffer_consts:
        # Constant index_map -> DMA'd once; Buffered(1) drops the second buffer.
        const2d = lambda shape: pl.BlockSpec(shape, lambda i: (0, 0),
                                             pipeline_mode=pl.Buffered(1))
    else:
        const2d = lambda shape: pl.BlockSpec(shape, lambda i: (0, 0))

    return pl.pallas_call(
        msa_transition_kernel,
        out_shape=jax.ShapeDtypeStruct((m_pad, c_m), out_dtype),
        grid_spec=pltpu.PrefetchScalarGridSpec(
            num_scalar_prefetch=0,
            grid=grid,
            in_specs=[
                row_spec,                       # m rows
                const2d((1, c_m)),              # gamma
                const2d((1, c_m)),              # beta
                const2d((c_m, hidden)),         # w1
                const2d((1, hidden)),           # b1
                const2d((hidden, c_m)),         # w2
                const2d((1, c_m)),              # b2
            ],
            out_specs=row_spec,
        ),
        compiler_params=pltpu.CompilerParams(
            dimension_semantics=("parallel",),
            vmem_limit_bytes=vmem_limit_bytes,
        ),
        cost_estimate=cost_estimate,
    )(x, gamma, beta, w1c, b1, w2c, b2)


def msa_transition(m, mask, params, *, tile_m=None, matmul_dtype=jnp.bfloat16,
                   out_dtype=None, vmem_limit_bytes=None):
    """m: [B, N_seq, N_res, c_m]; mask: [B, N_seq, N_res] (unused, matches ref).

    Pass a bf16 `m` together with out_dtype=jnp.bfloat16 for the bf16-I/O path
    when the producing layer already emits bf16 activations.
    """
    del mask  # The PyTorch forward never uses it.
    gamma, beta, w1, b1, w2, b2 = params
    B, S, R, c_m = m.shape
    hidden = w1.shape[1]
    M = B * S * R
    out_dtype = m.dtype if out_dtype is None else out_dtype

    # Pre-cast weights for the MXU (bf16 native on v6e/v7x; pass jnp.float32 to disable).
    w1c = w1.astype(matmul_dtype)
    w2c = w2.astype(matmul_dtype)

    gen_limit, gen_tile_cap = _vmem_limit_and_tile_cap()
    if vmem_limit_bytes is None:
        vmem_limit_bytes = gen_limit
    max_tile = gen_tile_cap if tile_m is None else tile_m

    in_bytes = jnp.dtype(m.dtype).itemsize
    out_bytes = jnp.dtype(out_dtype).itemsize
    w_bytes = jnp.dtype(matmul_dtype).itemsize

    tile_m = _pick_tile_m(
        M, c_m, hidden, in_bytes, out_bytes, w_bytes,
        budget_bytes=int(vmem_limit_bytes * 0.8),
        max_tile=max_tile,
        single_buffer_consts=True,
    )

    x = m.reshape(M, c_m)
    m_pad = pl.cdiv(M, tile_m) * tile_m
    if m_pad != M:
        x = jnp.pad(x, ((0, m_pad - M), (0, 0)))

    cost = pl.CostEstimate(
        flops=4 * M * c_m * hidden,                                # two GEMMs
        transcendentals=M,                                         # rsqrt per row
        bytes_accessed=(M * c_m * (in_bytes + out_bytes)
                        + 2 * c_m * hidden * w_bytes
                        + (3 * c_m + hidden) * 4),
    )

    kwargs = dict(tile_m=tile_m, c_m=c_m, hidden=hidden, m_pad=m_pad,
                  out_dtype=out_dtype, vmem_limit_bytes=vmem_limit_bytes,
                  cost_estimate=cost)
    try:
        out = _build_and_run(x, gamma, beta, w1c, b1, w2c, b2,
                             single_buffer_consts=True, **kwargs)
    except Exception:
        # Fallback if this JAX build rejects pipeline_mode=pl.Buffered(1).
        out = _build_and_run(x, gamma, beta, w1c, b1, w2c, b2,
                             single_buffer_consts=False, **kwargs)

    if m_pad != M:
        out = out[:M]
    return out.reshape(B, S, R, c_m)


def init_params(key, c_m, n):
    hidden = n * c_m
    k1, k2, k3, k4 = jax.random.split(key, 4)
    gamma = jnp.ones((1, c_m), jnp.float32)
    beta = jnp.zeros((1, c_m), jnp.float32)
    w1 = jax.random.normal(k1, (c_m, hidden), jnp.float32) * 0.05
    b1 = jax.random.normal(k2, (1, hidden), jnp.float32) * 0.01
    w2 = jax.random.normal(k3, (hidden, c_m), jnp.float32) * 0.05
    b2 = jax.random.normal(k4, (1, c_m), jnp.float32) * 0.01
    return gamma, beta, w1, b1, w2, b2


def reference(m, params, matmul_dtype):
    """Pure-JAX reference; matmul_dtype mirrors the kernel's MXU input dtype."""
    gamma, beta, w1, b1, w2, b2 = params
    x = m.astype(jnp.float32)
    mu = jnp.mean(x, axis=-1, keepdims=True)
    var = jnp.mean((x - mu) ** 2, axis=-1, keepdims=True)
    xn = (x - mu) * jax.lax.rsqrt(var + LN_EPS) * gamma[0] + beta[0]
    h = jnp.dot(xn.astype(matmul_dtype), w1.astype(matmul_dtype),
                preferred_element_type=jnp.float32) + b1[0]
    h = jnp.maximum(h, 0.0)
    y = jnp.dot(h.astype(matmul_dtype), w2.astype(matmul_dtype),
                preferred_element_type=jnp.float32) + b2[0]
    return y


if __name__ == "__main__":
    key = jax.random.PRNGKey(0)
    kp, km, kmask = jax.random.split(key, 3)

    # Small but lane-dense demo shape: rows = 2*8*16 = 256, c_m = 128, hidden = 512.
    B, N_seq, N_res, c_m, n = 2, 8, 16, 128, 4
    params = init_params(kp, c_m, n)
    m = jax.random.normal(km, (B, N_seq, N_res, c_m), jnp.float32)
    mask = (jax.random.uniform(kmask, (B, N_seq, N_res)) > 0.1).astype(jnp.float32)

    # f32 HBM I/O path.
    out = msa_transition(m, mask, params)
    out = jax.block_until_ready(out)
    assert out.shape == (B, N_seq, N_res, c_m)

    # Tight check vs. a precision-matched (bf16 MXU inputs, f32 accum) reference.
    ref_bf16 = reference(m, params, jnp.bfloat16).astype(m.dtype)
    assert jnp.allclose(out, ref_bf16, atol=3e-3, rtol=3e-3), "mismatch vs bf16-matched reference"

    # Looser sanity check vs. the pure-f32 module semantics (bf16 MXU rounding).
    ref_f32 = reference(m, params, jnp.float32).astype(m.dtype)
    assert jnp.allclose(out, ref_f32, atol=5e-2, rtol=5e-2), "mismatch vs f32 reference"

    # bf16 HBM I/O path (producer already emits bf16 activations).
    m_bf16 = m.astype(jnp.bfloat16)
    out_b = msa_transition(m_bf16, mask, params, out_dtype=jnp.bfloat16)
    out_b = jax.block_until_ready(out_b)
    ref_b = reference(m_bf16, params, jnp.bfloat16)          # f32 result from bf16 input
    assert out_b.dtype == jnp.bfloat16
    assert jnp.allclose(out_b.astype(jnp.float32), ref_b, atol=3e-2, rtol=3e-2), \
        "mismatch on bf16 I/O path"

    print("KERNEL_OK")
</pallas_src>

<mosaic_0001>
module attributes {stable_mosaic.version = 11 : i64} {
  func.func @msa_transition_kernel(%arg0: i32, %arg1: memref<64x128xf32, #tpu.memory_space<vmem>>, %arg2: memref<1x128xf32, #tpu.memory_space<vmem>>, %arg3: memref<1x128xf32, #tpu.memory_space<vmem>>, %arg4: memref<128x512xbf16, #tpu.memory_space<vmem>>, %arg5: memref<1x512xf32, #tpu.memory_space<vmem>>, %arg6: memref<512x128xbf16, #tpu.memory_space<vmem>>, %arg7: memref<1x128xf32, #tpu.memory_space<vmem>>, %arg8: memref<64x128xf32, #tpu.memory_space<vmem>>) attributes {dimension_semantics = [#tpu.dimension_semantics<parallel>], iteration_bounds = array<i64: 4>, scalar_prefetch = 0 : i64, scratch_operands = 0 : i64, tpu.core_type = #tpu.core_type<tc>, window_params = [{transform_indices = @transform_0, window_bounds = array<i64: 64, 128>}, {pipeline_mode = #tpu.pipeline_mode<synchronous>, transform_indices = @transform_1, window_bounds = array<i64: 1, 128>}, {pipeline_mode = #tpu.pipeline_mode<synchronous>, transform_indices = @transform_2, window_bounds = array<i64: 1, 128>}, {pipeline_mode = #tpu.pipeline_mode<synchronous>, transform_indices = @transform_3, window_bounds = array<i64: 128, 512>}, {pipeline_mode = #tpu.pipeline_mode<synchronous>, transform_indices = @transform_4, window_bounds = array<i64: 1, 512>}, {pipeline_mode = #tpu.pipeline_mode<synchronous>, transform_indices = @transform_5, window_bounds = array<i64: 512, 128>}, {pipeline_mode = #tpu.pipeline_mode<synchronous>, transform_indices = @transform_6, window_bounds = array<i64: 1, 128>}, {transform_indices = @transform_7, window_bounds = array<i64: 64, 128>}]} {
    %c0 = arith.constant 0 : index
    %c0_0 = arith.constant 0 : index
    %0 = vector.load %arg1[%c0, %c0_0] : memref<64x128xf32, #tpu.memory_space<vmem>>, vector<64x128xf32>
    %cst = arith.constant dense<0.000000e+00> : vector<64xf32>
    %1 = vector.multi_reduction <add>, %0, %cst [1] : vector<64x128xf32> to vector<64xf32>
    %2 = vector.shape_cast %1 : vector<64xf32> to vector<64x1xf32>
    %cst_1 = arith.constant 1.280000e+02 : f32
    %3 = vector.broadcast %cst_1 : f32 to vector<64x1xf32>
    %4 = arith.divf %2, %3 : vector<64x1xf32>
    %5 = vector.broadcast %4 : vector<64x1xf32> to vector<64x128xf32>
    %6 = arith.subf %0, %5 : vector<64x128xf32>
    %7 = arith.mulf %6, %6 : vector<64x128xf32>
    %cst_2 = arith.constant dense<0.000000e+00> : vector<64xf32>
    %8 = vector.multi_reduction <add>, %7, %cst_2 [1] : vector<64x128xf32> to vector<64xf32>
    %9 = vector.shape_cast %8 : vector<64xf32> to vector<64x1xf32>
    %cst_3 = arith.constant 1.280000e+02 : f32
    %10 = vector.broadcast %cst_3 : f32 to vector<64x1xf32>
    %11 = arith.divf %9, %10 : vector<64x1xf32>
    %cst_4 = arith.constant 9.99999974E-6 : f32
    %12 = vector.broadcast %cst_4 : f32 to vector<64x1xf32>
    %13 = arith.addf %11, %12 : vector<64x1xf32>
    %14 = math.rsqrt %13 : vector<64x1xf32>
    %15 = vector.broadcast %14 : vector<64x1xf32> to vector<64x128xf32>
    %16 = arith.mulf %6, %15 : vector<64x128xf32>
    %c0_5 = arith.constant 0 : index
    %c0_6 = arith.constant 0 : index
    %17 = vector.load %arg2[%c0_5, %c0_6] : memref<1x128xf32, #tpu.memory_space<vmem>>, vector<1x128xf32>
    %18 = vector.broadcast %17 : vector<1x128xf32> to vector<64x128xf32>
    %19 = arith.mulf %16, %18 : vector<64x128xf32>
    %c0_7 = arith.constant 0 : index
    %c0_8 = arith.constant 0 : index
    %20 = vector.load %arg3[%c0_7, %c0_8] : memref<1x128xf32, #tpu.memory_space<vmem>>, vector<1x128xf32>
    %21 = vector.broadcast %20 : vector<1x128xf32> to vector<64x128xf32>
    %22 = arith.addf %19, %21 : vector<64x128xf32>
    %23 = arith.truncf %22 : vector<64x128xf32> to vector<64x128xbf16>
    %c0_9 = arith.constant 0 : index
    %c0_10 = arith.constant 0 : index
    %24 = vector.load %arg4[%c0_9, %c0_10] : memref<128x512xbf16, #tpu.memory_space<vmem>>, vector<128x512xbf16>
    %cst_11 = arith.constant dense<0.000000e+00> : vector<64x512xf32>
    %25 = tpu.matmul %23, %24, %cst_11 {dimension_numbers = #tpu.dot_dimension_numbers<[1], [0], [0], [1], [0, 0, 1, 1], [], []>} : vector<64x128xbf16>, vector<128x512xbf16>, vector<64x512xf32> -> vector<64x512xf32>
    %c0_12 = arith.constant 0 : index
    %c0_13 = arith.constant 0 : index
    %26 = vector.load %arg5[%c0_12, %c0_13] : memref<1x512xf32, #tpu.memory_space<vmem>>, vector<1x512xf32>
    %27 = vector.broadcast %26 : vector<1x512xf32> to vector<64x512xf32>
    %28 = arith.addf %25, %27 : vector<64x512xf32>
    %cst_14 = arith.constant 0.000000e+00 : f32
    %29 = vector.broadcast %cst_14 : f32 to vector<64x512xf32>
    %30 = arith.maximumf %28, %29 : vector<64x512xf32>
    %31 = arith.truncf %30 : vector<64x512xf32> to vector<64x512xbf16>
    %c0_15 = arith.constant 0 : index
    %c0_16 = arith.constant 0 : index
    %32 = vector.load %arg6[%c0_15, %c0_16] : memref<512x128xbf16, #tpu.memory_space<vmem>>, vector<512x128xbf16>
    %cst_17 = arith.constant dense<0.000000e+00> : vector<64x128xf32>
    %33 = tpu.matmul %31, %32, %cst_17 {dimension_numbers = #tpu.dot_dimension_numbers<[1], [0], [0], [1], [0, 0, 1, 1], [], []>} : vector<64x512xbf16>, vector<512x128xbf16>, vector<64x128xf32> -> vector<64x128xf32>
    %c0_18 = arith.constant 0 : index
    %c0_19 = arith.constant 0 : index
    %34 = vector.load %arg7[%c0_18, %c0_19] : memref<1x128xf32, #tpu.memory_space<vmem>>, vector<1x128xf32>
    %35 = vector.broadcast %34 : vector<1x128xf32> to vector<64x128xf32>
    %36 = arith.addf %33, %35 : vector<64x128xf32>
    %c0_20 = arith.constant 0 : index
    %c0_21 = arith.constant 0 : index
    %37 = vector.load %arg8[%c0_20, %c0_21] : memref<64x128xf32, #tpu.memory_space<vmem>>, vector<64x128xf32>
    tpu.vector_store %arg8[%c0_20, %c0_21], %36 {strides = array<i32>} : memref<64x128xf32, #tpu.memory_space<vmem>>, vector<64x128xf32>,
    return
  }
  func.func @transform_0(%arg0: i32) -> (i32, i32) {
    %c0_i32 = arith.constant 0 : i32
    %c0_i32_0 = arith.constant 0 : i32
    return %arg0, %c0_i32 : i32, i32
  }
  func.func @transform_1(%arg0: i32) -> (i32, i32) {
    %c0_i32 = arith.constant 0 : i32
    %c0_i32_0 = arith.constant 0 : i32
    %c0_i32_1 = arith.constant 0 : i32
    return %c0_i32, %c0_i32_0 : i32, i32
  }
  func.func @transform_2(%arg0: i32) -> (i32, i32) {
    %c0_i32 = arith.constant 0 : i32
    %c0_i32_0 = arith.constant 0 : i32
    %c0_i32_1 = arith.constant 0 : i32
    return %c0_i32, %c0_i32_0 : i32, i32
  }
  func.func @transform_3(%arg0: i32) -> (i32, i32) {
    %c0_i32 = arith.constant 0 : i32
    %c0_i32_0 = arith.constant 0 : i32
    %c0_i32_1 = arith.constant 0 : i32
    return %c0_i32, %c0_i32_0 : i32, i32
  }
  func.func @transform_4(%arg0: i32) -> (i32, i32) {
    %c0_i32 = arith.constant 0 : i32
    %c0_i32_0 = arith.constant 0 : i32
    %c0_i32_1 = arith.constant 0 : i32
    return %c0_i32, %c0_i32_0 : i32, i32
  }
  func.func @transform_5(%arg0: i32) -> (i32, i32) {
    %c0_i32 = arith.constant 0 : i32
    %c0_i32_0 = arith.constant 0 : i32
    %c0_i32_1 = arith.constant 0 : i32
    return %c0_i32, %c0_i32_0 : i32, i32
  }
  func.func @transform_6(%arg0: i32) -> (i32, i32) {
    %c0_i32 = arith.constant 0 : i32
    %c0_i32_0 = arith.constant 0 : i32
    %c0_i32_1 = arith.constant 0 : i32
    return %c0_i32, %c0_i32_0 : i32, i32
  }
  func.func @transform_7(%arg0: i32) -> (i32, i32) {
    %c0_i32 = arith.constant 0 : i32
    %c0_i32_0 = arith.constant 0 : i32
    return %arg0, %c0_i32 : i32, i32
  }
}

module attributes {stable_mosaic.version = 11 : i64} {
  func.func @msa_transition_kernel(%arg0: i32, %arg1: memref<64x128xf32, #tpu.memory_space<vmem>>, %arg2: memref<1x128xf32, #tpu.memory_space<vmem>>, %arg3: memref<1x128xf32, #tpu.memory_space<vmem>>, %arg4: memref<128x512xbf16, #tpu.memory_space<vmem>>, %arg5: memref<1x512xf32, #tpu.memory_space<vmem>>, %arg6: memref<512x128xbf16, #tpu.memory_space<vmem>>, %arg7: memref<1x128xf32, #tpu.memory_space<vmem>>, %arg8: memref<64x128xf32, #tpu.memory_space<vmem>>) attributes {dimension_semantics = [#tpu.dimension_semantics<parallel>], iteration_bounds = array<i64: 4>, scalar_prefetch = 0 : i64, scratch_operands = 0 : i64, tpu.core_type = #tpu.core_type<tc>, window_params = [{transform_indices = @transform_0, window_bounds = array<i64: 64, 128>}, {pipeline_mode = #tpu.pipeline_mode<synchronous>, transform_indices = @transform_1, window_bounds = array<i64: 1, 128>}, {pipeline_mode = #tpu.pipeline_mode<synchronous>, transform_indices = @transform_2, window_bounds = array<i64: 1, 128>}, {pipeline_mode = #tpu.pipeline_mode<synchronous>, transform_indices = @transform_3, window_bounds = array<i64: 128, 512>}, {pipeline_mode = #tpu.pipeline_mode<synchronous>, transform_indices = @transform_4, window_bounds = array<i64: 1, 512>}, {pipeline_mode = #tpu.pipeline_mode<synchronous>, transform_indices = @transform_5, window_bounds = array<i64: 512, 128>}, {pipeline_mode = #tpu.pipeline_mode<synchronous>, transform_indices = @transform_6, window_bounds = array<i64: 1, 128>}, {transform_indices = @transform_7, window_bounds = array<i64: 64, 128>}]} {
    %c0 = arith.constant 0 : index
    %c0_0 = arith.constant 0 : index
    %0 = vector.load %arg1[%c0, %c0_0] : memref<64x128xf32, #tpu.memory_space<vmem>>, vector<64x128xf32>
    %cst = arith.constant dense<0.000000e+00> : vector<64xf32>
    %1 = vector.multi_reduction <add>, %0, %cst [1] : vector<64x128xf32> to vector<64xf32>
    %2 = vector.shape_cast %1 : vector<64xf32> to vector<64x1xf32>
    %cst_1 = arith.constant 1.280000e+02 : f32
    %3 = vector.broadcast %cst_1 : f32 to vector<64x1xf32>
    %4 = arith.divf %2, %3 : vector<64x1xf32>
    %5 = vector.broadcast %4 : vector<64x1xf32> to vector<64x128xf32>
    %6 = arith.subf %0, %5 : vector<64x128xf32>
    %7 = arith.mulf %6, %6 : vector<64x128xf32>
    %cst_2 = arith.constant dense<0.000000e+00> : vector<64xf32>
    %8 = vector.multi_reduction <add>, %7, %cst_2 [1] : vector<64x128xf32> to vector<64xf32>
    %9 = vector.shape_cast %8 : vector<64xf32> to vector<64x1xf32>
    %cst_3 = arith.constant 1.280000e+02 : f32
    %10 = vector.broadcast %cst_3 : f32 to vector<64x1xf32>
    %11 = arith.divf %9, %10 : vector<64x1xf32>
    %cst_4 = arith.constant 9.99999974E-6 : f32
    %12 = vector.broadcast %cst_4 : f32 to vector<64x1xf32>
    %13 = arith.addf %11, %12 : vector<64x1xf32>
    %14 = math.rsqrt %13 : vector<64x1xf32>
    %15 = vector.broadcast %14 : vector<64x1xf32> to vector<64x128xf32>
    %16 = arith.mulf %6, %15 : vector<64x128xf32>
    %c0_5 = arith.constant 0 : index
    %c0_6 = arith.constant 0 : index
    %17 = vector.load %arg2[%c0_5, %c0_6] : memref<1x128xf32, #tpu.memory_space<vmem>>, vector<1x128xf32>
    %18 = vector.broadcast %17 : vector<1x128xf32> to vector<64x128xf32>
    %19 = arith.mulf %16, %18 : vector<64x128xf32>
    %c0_7 = arith.constant 0 : index
    %c0_8 = arith.constant 0 : index
    %20 = vector.load %arg3[%c0_7, %c0_8] : memref<1x128xf32, #tpu.memory_space<vmem>>, vector<1x128xf32>
    %21 = vector.broadcast %20 : vector<1x128xf32> to vector<64x128xf32>
    %22 = arith.addf %19, %21 : vector<64x128xf32>
    %23 = arith.truncf %22 : vector<64x128xf32> to vector<64x128xbf16>
    %c0_9 = arith.constant 0 : index
    %c0_10 = arith.constant 0 : index
    %24 = vector.load %arg4[%c0_9, %c0_10] : memref<128x512xbf16, #tpu.memory_space<vmem>>, vector<128x512xbf16>
    %cst_11 = arith.constant dense<0.000000e+00> : vector<64x512xf32>
    %25 = tpu.matmul %23, %24, %cst_11 {dimension_numbers = #tpu.dot_dimension_numbers<[1], [0], [0], [1], [0, 0, 1, 1], [], []>} : vector<64x128xbf16>, vector<128x512xbf16>, vector<64x512xf32> -> vector<64x512xf32>
    %c0_12 = arith.constant 0 : index
    %c0_13 = arith.constant 0 : index
    %26 = vector.load %arg5[%c0_12, %c0_13] : memref<1x512xf32, #tpu.memory_space<vmem>>, vector<1x512xf32>
    %27 = vector.broadcast %26 : vector<1x512xf32> to vector<64x512xf32>
    %28 = arith.addf %25, %27 : vector<64x512xf32>
    %cst_14 = arith.constant 0.000000e+00 : f32
    %29 = vector.broadcast %cst_14 : f32 to vector<64x512xf32>
    %30 = arith.maximumf %28, %29 : vector<64x512xf32>
    %31 = arith.truncf %30 : vector<64x512xf32> to vector<64x512xbf16>
    %c0_15 = arith.constant 0 : index
    %c0_16 = arith.constant 0 : index
    %32 = vector.load %arg6[%c0_15, %c0_16] : memref<512x128xbf16, #tpu.memory_space<vmem>>, vector<512x128xbf16>
    %cst_17 = arith.constant dense<0.000000e+00> : vector<64x128xf32>
    %33 = tpu.matmul %31, %32, %cst_17 {dimension_numbers = #tpu.dot_dimension_numbers<[1], [0], [0], [1], [0, 0, 1, 1], [], []>} : vector<64x512xbf16>, vector<512x128xbf16>, vector<64x128xf32> -> vector<64x128xf32>
    %c0_18 = arith.constant 0 : index
    %c0_19 = arith.constant 0 : index
    %34 = vector.load %arg7[%c0_18, %c0_19] : memref<1x128xf32, #tpu.memory_space<vmem>>, vector<1x128xf32>
    %35 = vector.broadcast %34 : vector<1x128xf32> to vector<64x128xf32>
    %36 = arith.addf %33, %35 : vector<64x128xf32>
    %c0_20 = arith.constant 0 : index
    %c0_21 = arith.constant 0 : index
    %37 = vector.load %arg8[%c0_20, %c0_21] : memref<64x128xf32, #tpu.memory_space<vmem>>, vector<64x128xf32>
    tpu.vector_store %arg8[%c0_20, %c0_21], %36 {strides = array<i32>} : memref<64x128xf32, #tpu.memory_space<vmem>>, vector<64x128xf32>,
    return
  }
  func.func @transform_0(%arg0: i32) -> (i32, i32) {
    %c0_i32 = arith.constant 0 : i32
    %c0_i32_0 = arith.constant 0 : i32
    return %arg0, %c0_i32 : i32, i32
  }
  func.func @transform_1(%arg0: i32) -> (i32, i32) {
    %c0_i32 = arith.constant 0 : i32
    %c0_i32_0 = arith.constant 0 : i32
    %c0_i32_1 = arith.constant 0 : i32
    return %c0_i32, %c0_i32_0 : i32, i32
  }
  func.func @transform_2(%arg0: i32) -> (i32, i32) {
    %c0_i32 = arith.constant 0 : i32
    %c0_i32_0 = arith.constant 0 : i32
    %c0_i32_1 = arith.constant 0 : i32
    return %c0_i32, %c0_i32_0 : i32, i32
  }
  func.func @transform_3(%arg0: i32) -> (i32, i32) {
    %c0_i32 = arith.constant 0 : i32
    %c0_i32_0 = arith.constant 0 : i32
    %c0_i32_1 = arith.constant 0 : i32
    return %c0_i32, %c0_i32_0 : i32, i32
  }
  func.func @transform_4(%arg0: i32) -> (i32, i32) {
    %c0_i32 = arith.constant 0 : i32
    %c0_i32_0 = arith.constant 0 : i32
    %c0_i32_1 = arith.constant 0 : i32
    return %c0_i32, %c0_i32_0 : i32, i32
  }
  func.func @transform_5(%arg0: i32) -> (i32, i32) {
    %c0_i32 = arith.constant 0 : i32
    %c0_i32_0 = arith.constant 0 : i32
    %c0_i32_1 = arith.constant 0 : i32
    return %c0_i32, %c0_i32_0 : i32, i32
  }
  func.func @transform_6(%arg0: i32) -> (i32, i32) {
    %c0_i32 = arith.constant 0 : i32
    %c0_i32_0 = arith.constant 0 : i32
    %c0_i32_1 = arith.constant 0 : i32
    return %c0_i32, %c0_i32_0 : i32, i32
  }
  func.func @transform_7(%arg0: i32) -> (i32, i32) {
    %c0_i32 = arith.constant 0 : i32
    %c0_i32_0 = arith.constant 0 : i32
    return %arg0, %c0_i32 : i32, i32
  }
}

</mosaic_0001>

<bundles_post_ra>
// kernel: tpu_custom_call.1
= control target key start
LH: loop header
LB: loop body
LE: loop exit
PB: predicated region body
PF: predicated region fallthrough
CT: control target
= control target key end

     0   :  { %12 = vsyncpa [#allocation3], 0  ;;  %s2295_s0 = inlined_call_operand.hbm [shape: f32[256,128], index: 0, kind: input, shape index: {}]   ;;  %s2296_s1 = inlined_call_operand.vmem [shape: f32[1,128], index: 1, kind: input, shape index: {}]   ;;  %s2297_s2 = inlined_call_operand.vmem [shape: f32[1,128], index: 2, kind: input, shape index: {}]   ;;  %s2298_s3 = inlined_call_operand.hbm [shape: bf16[128,512], index: 3, kind: input, shape index: {}]   ;;  %s2299_s4 = inlined_call_operand.vmem [shape: f32[1,512], index: 4, kind: input, shape index: {}]   ;;  %s2300_s5 = inlined_call_operand.hbm [shape: bf16[512,128], index: 5, kind: input, shape index: {}]   ;;  %s2301_s6 = inlined_call_operand.vmem [shape: f32[1,128], index: 6, kind: input, shape index: {}]   ;;  %s2302_s7 = inlined_call_operand.hbm [shape: f32[256,128], index: 7, kind: output, shape index: {}]  }
   0x1   :  { %14 = vsyncpa [#allocation3 + $0x1], 0 }
   0x2   :  { %15 = vsyncpa [#allocation6], 0 }
   0x3   :  { %16 = vsyncpa [#allocation4], 0 }
   0x4   :  { %18 = vsyncpa [#allocation4 + $0x1], 0  ;;  %s1925_s24 = smov 0   ;;  %s1927_s25 = smov 0  }
   0x5   :  { %s1929_s26 = smov 0   ;;  %s1931_s27 = smov 0  }
   0x6 LB: > { %s1946_s28 = sadd.s32 4294967295, %s1870_s27   ;;  %s1375_s29 = sadd.s32 4294967294, %s1870_s27   ;;  %s1870_s27 = sphi %s1931_s27, %s2321_s27   ;;  %s1866_s26 = sphi %s1929_s26, %s2320_s26   ;;  %s1862_s25 = sphi %s1927_s25, %s2319_s25   ;;  %s1858_s24 = sphi %s1925_s24, %s2318_s24  }
   0x7   : > { %p44_p0 = scmp.ne.s32.totalorder %s1862_s25, %s1858_s24  ;;  %p2303_p1 = scmp.eq.s32.totalorder %s1946_s28, 0 }
   0x8   : > { %p200_p3 = scmp.eq.s32.totalorder %s1375_s29, 3  ;;  %p1376_p5 = scmp.ge.s32.totalorder %s1870_s27, 1 }
   0x9   : > { %p1955_p4 = por %p2303_p1, %p44_p0  ;;  %p207_p7 = scmp.lt.s32.totalorder %s1870_s27, 5 }
   0xa   : > { %p1960_p6 = por %p200_p3, %p44_p0  ;;  %s1872_s10 = smov [#allocation5]  }
   0xb   : > { %s2306_s30 = scalar_select %p1955_p4, 1, 0 }
   0xc   : > { %s2307_s8 = scalar_select %p1960_p6, 1, 0 }
   0xd   : > { %p1965_p8 = pnand %p1376_p5, %p207_p7  ;;  %s225_s11 = sshll.u32 %s1872_s10, 4  ;;  %s226_s11 = int_to_ptr.vmem [resolvable:$true] %s225_s11 }
   0xe   : > { %s1873_s13 = smov [#allocation7]   ;;  %s1714_s17 = scalar_lea.hbm %s2298_s3, 4096 }
   0xf   : > { %s2308_s9 = scalar_select %p1965_p8, 1, 0 }
  0x10   : > { %p1554_p9 = pneg %p1965_p8  ;;  %s241_s14 = sshll.u32 %s1873_s13, 4  ;;  %s1977_s14 = int_to_ptr.vmem [resolvable:$true] %s241_s14 }
  0x11   : > { %p1715_p11 = scmp.ne.s32.totalorder %s2298_s3, %s1714_s17  ;;  %p1721_p3 = scmp.lt.u32.totalorder %s1714_s17, %s2298_s3 }
  0x12   : > { %p1973_p10 = pnand %p1554_p9, %p2303_p1 }
  0x14   : > { %p1716_p12 = pneg %p1973_p10 }
  0x16   : > { %p1717_p13 = pnand %p1716_p12, %p1715_p11 }
  0x18   : > { %p1718_p0 = pneg %p1717_p13 }
  0x1a   : > { %p1723_p5 = pnand %p1721_p3, %p1718_p0 }
  0x1c   : > { %1726 = shalt.err (!%p1723_p5)
}
  0x1d   : > { %s1727_s22 = scalar_lea.vmem %s226_s11, 4096  ;;  %p1735_p2 = scmp.lt.s32.totalorder %s226_s11, %s226_s11 }
  0x1e   : > { %p1728_p7 = scmp.ne.s32.totalorder %s226_s11, %s1727_s22  ;;  %p1736_p6 = scmp.lt.s32.totalorder %s1727_s22, %s1727_s22 }
  0x20   : > { %p1730_p9 = pnand %p1728_p7, %p1716_p12  ;;  %p1737_p4 = por %p1736_p6, %p1735_p2 }
  0x22   : > { %p1731_p1 = pneg %p1730_p9 }
  0x24   : > { %p1738_p8 = pnand %p1737_p4, %p1731_p1 }
  0x26   : > { %1741 = shalt.err (!%p1738_p8)
}
  0x27   : > { %s1874_s23 = smov 256   ;;  %s1875_s29 = smov 16  }
  0x28   : > { %1557 = dma.hbm_to_vmem [thread:$0]  (!%p1973_p10), %s2298_s3, 4096, %s226_s11, [#allocation6], %s1874_s23, %s1874_s23, %s1875_s29  }
  0x29   : > { %s1742_s17 = scalar_lea.hbm %s2300_s5, 4096 }
  0x2a   : > { %p1743_p11 = scmp.ne.s32.totalorder %s2300_s5, %s1742_s17  ;;  %p1749_p4 = scmp.lt.u32.totalorder %s1742_s17, %s2300_s5 }
  0x2c   : > { %p1745_p1 = pnand %p1743_p11, %p1716_p12 }
  0x2e   : > { %p1746_p2 = pneg %p1745_p1 }
  0x30   : > { %p1751_p6 = pnand %p1749_p4, %p1746_p2 }
  0x32   : > { %1754 = shalt.err (!%p1751_p6)
}
  0x33   : > { %s1755_s11 = scalar_lea.vmem %s1977_s14, 4096  ;;  %p1763_p3 = scmp.lt.s32.totalorder %s1977_s14, %s1977_s14 }
  0x34   : > { %p1756_p8 = scmp.ne.s32.totalorder %s1977_s14, %s1755_s11  ;;  %p1764_p5 = scmp.lt.s32.totalorder %s1755_s11, %s1755_s11 }
  0x36   : > { %p1758_p13 = pnand %p1756_p8, %p1716_p12  ;;  %p1765_p7 = por %p1764_p5, %p1763_p3 }
  0x38   : > { %p1759_p0 = pneg %p1758_p13 }
  0x3a   : > { %p1766_p9 = pnand %p1765_p7, %p1759_p0 }
  0x3c   : > { %1769 = shalt.err (!%p1766_p9)
}
  0x3d   : > { %s1876_s22 = smov 64   ;;  %s1877_s23 = smov 4  }
  0x3e   : > { %1560 = dma.hbm_to_vmem [thread:$0]  (!%p1973_p10), %s2300_s5, 4096, %s1977_s14, [#allocation6], %s1876_s22, %s1876_s22, %s1877_s23  }
  0x3f   : > { %s2027_s13 = sadd.s32 1, %s1870_s27   ;;  %s31_s16 = sadd.s32 1, %s1866_s26 }
  0x40   : > { %s28_s15 = ssub.s32 %s1870_s27, %s2027_s13  ;;  %p38_p11 = scmp.ne.s32.totalorder %s1866_s26, %s1862_s25 }
  0x41   : > { %p29_p12 = scmp.eq.s32.totalorder %s28_s15, 0  ;;  %p39_p1 = scmp.eq.s32.totalorder %s1870_s27, 0 }
  0x42   : > { %p2310_p4 = scmp.eq.s32.totalorder %s1946_s28, 3  ;;  %p1571_p8 = scmp.lt.s32.totalorder %s1870_s27, 4 }
  0x43   : > { %s2036_s17 = scalar_select %p29_p12, %s1866_s26, %s31_s16  }
  0x44   : > { %p40_p2 = por %p39_p1, %p38_p11  ;;  %p2040_p6 = por %p2310_p4, %p38_p11 }
  0x45   : > { %s258_s12 = sand.u32 1, %s1866_s26   ;;  %s1460_s14 = sshll.u32 %s1870_s27, 10 }
  0x46   : > { %s1380_s19 = sshll.u32 %s258_s12, 6  ;;  %s2050_s11 = scalar_lea.hbm %s2295_s0, %s1460_s14 }
  0x47   : > { %s262_s22 = scalar_lea.vmem [#allocation2], %s1380_s19  ;;  %p2054_p10 = pnand %p1571_p8, %p40_p2 }
  0x48   : > { %s269_s23 = sshll.u32 %s262_s22, 4  ;;  %s2058_s10 = scalar_lea.sflag [#allocation3], %s258_s12  ;;  %s2052_s23 = int_to_ptr.vmem [resolvable:$true] %s269_s23 }
  0x49   : > { %s1770_s15 = scalar_lea.hbm %s2050_s11, 1024  ;;  %p1772_p0 = pneg %p2054_p10 }
  0x4a   : > { %p1771_p13 = scmp.ne.s32.totalorder %s2050_s11, %s1770_s15  ;;  %s1775_s14 = scalar_lea.hbm %s2295_s0, 4096 }
  0x4b   : > { %p1776_p7 = scmp.lt.u32.totalorder %s2050_s11, %s2295_s0  ;;  %p1777_p9 = scmp.lt.u32.totalorder %s1775_s14, %s1770_s15 }
  0x4c   : > { %p1773_p3 = pnand %p1772_p0, %p1771_p13  ;;  %p1779_p11 = scmp.lt.u32.totalorder %s1770_s15, %s2050_s11 }
  0x4d   : > { %p1778_p12 = por %p1777_p9, %p1776_p7 }
  0x4e   : > { %p1774_p5 = pneg %p1773_p3 }
  0x4f   : > { %p1780_p1 = por %p1779_p11, %p1778_p12 }
  0x51   : > { %p1781_p2 = pnand %p1780_p1, %p1774_p5 }
  0x53   : > { %1784 = shalt.err (!%p1781_p2)
}
  0x54   : > { %s1785_s12 = scalar_lea.vmem %s2052_s23, 1024  ;;  %s1878_s22 = smov [#allocation2]  }
  0x55   : > { %p1786_p4 = scmp.ne.s32.totalorder %s2052_s23, %s1785_s12  ;;  %s1790_s16 = sshll.u32 %s1878_s22, 4  ;;  %s1791_s16 = int_to_ptr.vmem [resolvable:$false] %s1790_s16 }
  0x56   : > { %s1792_s19 = scalar_lea.vmem %s1791_s16, 2048  ;;  %p1793_p3 = scmp.lt.s32.totalorder %s2052_s23, %s1791_s16 }
  0x57   : > { %p1788_p8 = pnand %p1786_p4, %p1772_p0  ;;  %p1794_p7 = scmp.lt.s32.totalorder %s1792_s19, %s1785_s12 }
  0x59   : > { %p1789_p13 = pneg %p1788_p8  ;;  %p1795_p9 = por %p1794_p7, %p1793_p3 }
  0x5b   : > { %p1796_p12 = pnand %p1795_p9, %p1789_p13 }
  0x5d   : > { %1799 = shalt.err (!%p1796_p12)
}
  0x5e   : > { %s1879_s15 = smov 128   ;;  %s1880_s14 = smov 8  }
  0x5f   : > { %1564 = dma.hbm_to_vmem [thread:$0]  (!%p2054_p10), %s2050_s11, 1024, %s2052_s23, %s2058_s10, %s1879_s15, %s1879_s15, %s1880_s14  }
  0x60   : > { %p2313_p0 = scmp.ne.s32.totalorder %s2308_s9, 0 }
  0x61   : > { %s2089_s20 = sand.u32 (!%p2313_p0), 1, %s1862_s25   ;;  %p2314_p5 = scmp.ne.s32.totalorder (!%p2313_p0), %s2306_s30, 0 }
  0x62   : > { %281 = sbr.rel (%p2313_p0) target bundleno = 909 (0x38d), region = 48  ;;  %s1384_s21 = sshll.u32 (!%p2313_p0), %s2089_s20, 6 }
  0x63   : > { %s284_s12 = scalar_lea.sflag (!%p2313_p0), [#allocation3], %s2089_s20  ;;  %s287_s22 = scalar_lea.vmem (!%p2313_p0), [#allocation2], %s1384_s21 }
  0x69   : > { %1845 = dma.done.wait (%p2314_p5), %s284_s12, 1024  }
  0x6a   : > { %1847 = vsyncadd (%p2314_p5), %s284_s12, 4294966272  ;;  %p2315_p10 = scmp.eq.s32.totalorder %s1946_s28, 0 }
  0x6c   : > { %1849 = dma.done.wait (%p2315_p10), [#allocation6], 8192   ;;  %p2316_p11 = pmov %p2315_p10 }
  0x6d   : > { %v329_v0 = vld [vmem:[%s287_s22] sm:$0xff]  ;;  %v331_v1 = vld [vmem:[%s287_s22 + $0x10] sm:$0xff]  ;;  %v330_v2 = vld [vmem:[%s287_s22 + $0x8] sm:$0xff]  ;;  %s2229_s15 = scalar_lea.vmem [#allocation8], %s1384_s21  ;;  %s1461_s21 = sshll.u32 %s1946_s28, 10 }
  0x6e   : > { %1851 = vsyncadd (%p2316_p11), [#allocation6], 4294959104  ;;  %337 = vadd.xlane.f32.xlu0 %v329_v0  ;;  %341 = vadd.xlane.f32.xlu1 %v331_v1  ;;  %v332_v3 = vld [vmem:[%s287_s22 + $0x18] sm:$0xff]  ;;  %v333_v4 = vld [vmem:[%s287_s22 + $0x20] sm:$0xff]  ;;  %s1283_s14 = sshll.u32 %s2229_s15, 4  ;;  %s2250_s30 = scalar_lea.hbm %s2302_s7, %s1461_s21  ;;  %s2244_s14 = int_to_ptr.vmem [resolvable:$true] %s1283_s14 }
  0x6f   : > { %v334_v5 = vld [vmem:[%s287_s22 + $0x28] sm:$0xff]  ;;  %v335_v6 = vld [vmem:[%s287_s22 + $0x30] sm:$0xff]  ;;  %v336_v7 = vld [vmem:[%s287_s22 + $0x38] sm:$0xff]  ;;  %s1270_s9 = scalar_lea.sflag [#allocation4], %s2089_s20  ;;  %s1800_s11 = scalar_lea.vmem %s2244_s14, 1024 }
  0x70   : > { %v1618_v8 = vld [vmem:[#allocation5 + $0x4] ss:$16 sps:$4 sm:$0xff]   ;;  %v1620_v9 = vld [vmem:[#allocation5 + $0xc] ss:$16 sps:$4 sm:$0xff]   ;;  %v1622_v10 = vld [vmem:[#allocation5] ss:$16 sps:$4 sm:$0xff]   ;;  %p1801_p1 = scmp.ne.s32.totalorder %s2244_s14, %s1800_s11 }
  0x71   : > { %v1623_v11 = vld [vmem:[#allocation5 + $0x8] ss:$16 sps:$4 sm:$0xff]   ;;  %v1624_v12 = vld [vmem:[#allocation5 + $0x24] ss:$16 sps:$4 sm:$0xff]   ;;  %v1626_v13 = vld [vmem:[#allocation5 + $0x2c] ss:$16 sps:$4 sm:$0xff]   ;;  %674 = vmatprep.subr.bf16.mxu0 %v1618_v8  ;;  %747 = vmatprep.subr.bf16.mxu1 %v1620_v9 }
  0x72   : > { %339 = vadd.xlane.f32.xlu0 %v330_v2  ;;  %343 = vadd.xlane.f32.xlu1 %v332_v3  ;;  %v1628_v46 = vld [vmem:[#allocation5 + $0x20] ss:$16 sps:$4 sm:$0xff]   ;;  %v1629_v47 = vld [vmem:[#allocation5 + $0x28] ss:$16 sps:$4 sm:$0xff]   ;;  %v1630_v48 = vld [vmem:[#allocation5 + $0x44] ss:$16 sps:$4 sm:$0xff]   ;;  %p1802_p2 = pnand %p1801_p1, %p2040_p6 }
  0x73   : > { %675 = vmatpush1.bf16.msra.mxu0 %v1622_v10  ;;  %748 = vmatpush1.bf16.msra.mxu1 %v1623_v11  ;;  %v1632_v49 = vld [vmem:[#allocation5 + $0x4c] ss:$16 sps:$4 sm:$0xff]   ;;  %v1634_v50 = vld [vmem:[#allocation5 + $0x40] ss:$16 sps:$4 sm:$0xff]   ;;  %v1635_v51 = vld [vmem:[#allocation5 + $0x48] ss:$16 sps:$4 sm:$0xff]  }
  0x74   : > { %676 = vmatprep.subr.bf16.mxu0 %v1624_v12  ;;  %749 = vmatprep.subr.bf16.mxu1 %v1626_v13  ;;  %v1636_v52 = vld [vmem:[#allocation5 + $0x64] ss:$16 sps:$4 sm:$0xff]   ;;  %v1638_v53 = vld [vmem:[#allocation5 + $0x6c] ss:$16 sps:$4 sm:$0xff]   ;;  %v1640_v54 = vld [vmem:[#allocation5 + $0x60] ss:$16 sps:$4 sm:$0xff]   ;;  %p1803_p4 = pneg %p1802_p2 }
  0x75   : > { %v1641_v55 = vld [vmem:[#allocation5 + $0x68] ss:$16 sps:$4 sm:$0xff]   ;;  %v1642_v56 = vld [vmem:[#allocation5 + $0x84] ss:$16 sps:$4 sm:$0xff]   ;;  %v1644_v57 = vld [vmem:[#allocation5 + $0x8c] ss:$16 sps:$4 sm:$0xff]  }
  0x76   : > { %345 = vadd.xlane.f32.xlu0 %v333_v4  ;;  %347 = vadd.xlane.f32.xlu1 %v334_v5  ;;  %v1646_v58 = vld [vmem:[#allocation5 + $0x80] ss:$16 sps:$4 sm:$0xff]   ;;  %v1647_v59 = vld [vmem:[#allocation5 + $0x88] ss:$16 sps:$4 sm:$0xff]   ;;  %v1648_v60 = vld [vmem:[#allocation5 + $0xa4] ss:$16 sps:$4 sm:$0xff]  }
  0x77   : > { %677 = vmatpush1.bf16.msra.mxu0 %v1628_v46  ;;  %750 = vmatpush1.bf16.msra.mxu1 %v1629_v47  ;;  %v1650_v61 = vld [vmem:[#allocation5 + $0xac] ss:$16 sps:$4 sm:$0xff]   ;;  %v1652_v62 = vld [vmem:[#allocation5 + $0xa0] ss:$16 sps:$4 sm:$0xff]   ;;  %v1653_v63 = vld [vmem:[#allocation5 + $0xa8] ss:$16 sps:$4 sm:$0xff]  }
  0x78   : > { %678 = vmatprep.subr.bf16.mxu0 %v1630_v48  ;;  %751 = vmatprep.subr.bf16.mxu1 %v1632_v49  ;;  %v1881_v8 = vmov 0   ;;  %v1666_v9 = vld [vmem:[#allocation7 + $0x40] sm:$0xff]   ;;  %s1882_s28 = smov [#allocation8]  }
  0x79   : > { %706 = vmatprep.mubr.bf16.mxu0 %v1881_v8  ;;  %779 = vmatprep.mubr.bf16.mxu1 %v1881_v8  ;;  %v1668_v10 = vld [vmem:[#allocation7 + $0xc0] sm:$0xff]   ;;  %s1804_s23 = sshll.u32 %s1882_s28, 4  ;;  %s1805_s23 = int_to_ptr.vmem [resolvable:$false] %s1804_s23 }
  0x7a   : > { %349 = vadd.xlane.f32.xlu0 %v335_v6  ;;  %351 = vadd.xlane.f32.xlu1 %v336_v7  ;;  %s1806_s29 = scalar_lea.vmem %s1805_s23, 2048  ;;  %p1807_p8 = scmp.lt.s32.totalorder %s2244_s14, %s1805_s23 }
  0x7b   : > { %679 = vmatpush1.bf16.msra.mxu0 %v1634_v50  ;;  %752 = vmatpush1.bf16.msra.mxu1 %v1635_v51  ;;  %p1808_p13 = scmp.lt.s32.totalorder %s1806_s29, %s1800_s11 }
  0x7c   : > { %680 = vmatprep.subr.bf16.mxu0 %v1636_v52  ;;  %753 = vmatprep.subr.bf16.mxu1 %v1638_v53 }
  0x7d   : > { %p1809_p3 = por %p1808_p13, %p1807_p8 }
  0x7f   : > { %681 = vmatpush1.bf16.msra.mxu0 %v1640_v54  ;;  %754 = vmatpush1.bf16.msra.mxu1 %v1641_v55  ;;  %p1810_p7 = pnand %p1809_p3, %p1803_p4 }
  0x80   : > { %682 = vmatprep.subr.bf16.mxu0 %v1642_v56  ;;  %755 = vmatprep.subr.bf16.mxu1 %v1644_v57  ;;  %v1667_v57 = vld [vmem:[#allocation7] sm:$0xff]  }
  0x83   : > { %683 = vmatpush1.bf16.msra.mxu0 %v1646_v58  ;;  %756 = vmatpush1.bf16.msra.mxu1 %v1647_v59  ;;  %v1669_v58 = vld [vmem:[#allocation7 + $0x80] sm:$0xff]  }
  0x84   : > { %684 = vmatprep.subr.bf16.mxu0 %v1648_v60  ;;  %757 = vmatprep.subr.bf16.mxu1 %v1650_v61  ;;  %v1670_v60 = vld [vmem:[#allocation7 + $0x48] sm:$0xff]  }
  0x85   : > { %v1672_v61 = vld [vmem:[#allocation7 + $0xc8] sm:$0xff]  }
  0x87   : > { %685 = vmatpush1.bf16.msra.mxu0 %v1652_v62  ;;  %758 = vmatpush1.bf16.msra.mxu1 %v1653_v63 }
  0xfb   : > { %v338_v14 = vpop.xlane.xlu0 %337  ;;  %v342_v15 = vpop.xlane.xlu1 %341 }
  0xfc   : > { %v354_v16 = vmul.f32 0.0078125, %v338_v14  ;;  %v356_v17 = vmul.f32 0.0078125, %v342_v15 }
  0xfe   : > { %v2103_v18 = vsub.f32 %v329_v0, %v354_v16  ;;  %v2105_v19 = vsub.f32 %v331_v1, %v356_v17  ;;  %v1654_v0 = vld [vmem:[#allocation5 + $0xc4] ss:$16 sps:$4 sm:$0xff]   ;;  %v1656_v1 = vld [vmem:[#allocation5 + $0xcc] ss:$16 sps:$4 sm:$0xff]  }
  0xff   : > { %v340_v20 = vpop.xlane.xlu0 %339  ;;  %v344_v21 = vpop.xlane.xlu1 %343  ;;  %686 = vmatprep.subr.bf16.mxu0 %v1654_v0  ;;  %759 = vmatprep.subr.bf16.mxu1 %v1656_v1  ;;  %v1671_v0 = vld [vmem:[#allocation7 + $0x8] sm:$0xff]  }
 0x100   : > { %v355_v22 = vmul.f32 0.0078125, %v340_v20  ;;  %v370_v23 = vmul.f32 %v2103_v18, %v2103_v18  ;;  %v357_v24 = vmul.f32 0.0078125, %v344_v21  ;;  %v372_v27 = vmul.f32 %v2105_v19, %v2105_v19  ;;  %v1673_v1 = vld [vmem:[#allocation7 + $0x88] sm:$0xff]  }
 0x102   : > { %v2109_v25 = vsub.f32 %v330_v2, %v355_v22  ;;  %378 = vadd.xlane.f32.xlu0 %v370_v23  ;;  %v2111_v26 = vsub.f32 %v332_v3, %v357_v24  ;;  %v1658_v2 = vld [vmem:[#allocation5 + $0xc0] ss:$16 sps:$4 sm:$0xff]   ;;  %v1659_v3 = vld [vmem:[#allocation5 + $0xc8] ss:$16 sps:$4 sm:$0xff]  }
 0x103   : > { %v346_v28 = vpop.xlane.xlu0 %345  ;;  %v348_v29 = vpop.xlane.xlu1 %347  ;;  %687 = vmatpush1.bf16.msra.mxu0 %v1658_v2  ;;  %760 = vmatpush1.bf16.msra.mxu1 %v1659_v3  ;;  %v1674_v2 = vld [vmem:[#allocation7 + $0x50] sm:$0xff]  }
 0x104   : > { %v358_v30 = vmul.f32 0.0078125, %v346_v28  ;;  %v371_v31 = vmul.f32 %v2109_v25, %v2109_v25  ;;  %v359_v32 = vmul.f32 0.0078125, %v348_v29  ;;  %v373_v35 = vmul.f32 %v2111_v26, %v2111_v26  ;;  %v1676_v3 = vld [vmem:[#allocation7 + $0xd0] sm:$0xff]  }
 0x106   : > { %v2117_v33 = vsub.f32 %v333_v4, %v358_v30  ;;  %382 = vadd.xlane.f32.xlu0 %v372_v27  ;;  %380 = vadd.xlane.f32.xlu1 %v371_v31  ;;  %v2119_v34 = vsub.f32 %v334_v5, %v359_v32  ;;  %v1660_v4 = vld [vmem:[#allocation5 + $0xe4] ss:$16 sps:$4 sm:$0xff]   ;;  %v1662_v5 = vld [vmem:[#allocation5 + $0xec] ss:$16 sps:$4 sm:$0xff]  }
 0x107   : > { %v350_v36 = vpop.xlane.xlu0 %349  ;;  %v352_v37 = vpop.xlane.xlu1 %351  ;;  %688 = vmatprep.subr.bf16.mxu0 %v1660_v4  ;;  %761 = vmatprep.subr.bf16.mxu1 %v1662_v5 }
 0x108   : > { %v360_v38 = vmul.f32 0.0078125, %v350_v36  ;;  %v374_v39 = vmul.f32 %v2117_v33, %v2117_v33  ;;  %v361_v40 = vmul.f32 0.0078125, %v352_v37  ;;  %v375_v43 = vmul.f32 %v2119_v34, %v2119_v34 }
 0x10a   : > { %v2125_v41 = vsub.f32 %v335_v6, %v360_v38  ;;  %384 = vadd.xlane.f32.xlu1 %v373_v35  ;;  %386 = vadd.xlane.f32.xlu0 %v374_v39  ;;  %v2127_v42 = vsub.f32 %v336_v7, %v361_v40  ;;  %v1664_v6 = vld [vmem:[#allocation5 + $0xe0] ss:$16 sps:$4 sm:$0xff]   ;;  %v1665_v7 = vld [vmem:[#allocation5 + $0xe8] ss:$16 sps:$4 sm:$0xff]  }
 0x10b   : > { %689 = vmatpush1.bf16.msra.mxu0 %v1664_v6  ;;  %762 = vmatpush1.bf16.msra.mxu1 %v1665_v7  ;;  %v2141_v40 = vld [vmem:[%s2296_s1] ss:$0 sm:$0xff] }
 0x10c   : > { %v376_v44 = vmul.f32 %v2125_v41, %v2125_v41  ;;  %v377_v45 = vmul.f32 %v2127_v42, %v2127_v42  ;;  %1462 = vmatprep.subr.bf16.mxu0 %v1666_v9  ;;  %1502 = vmatprep.subr.bf16.mxu1 %v1668_v10  ;;  %v1675_v9 = vld [vmem:[#allocation7 + $0x10] sm:$0xff]  }
 0x10d   : > { %v1677_v10 = vld [vmem:[#allocation7 + $0x90] sm:$0xff]  }
 0x10e   : > { %388 = vadd.xlane.f32.xlu1 %v375_v43  ;;  %390 = vadd.xlane.f32.xlu0 %v376_v44 }
 0x112   : > { %392 = vadd.xlane.f32.xlu1 %v377_v45 }
 0x18f   : > { %v379_v11 = vpop.xlane.xlu0 %378 }
 0x190   : > { %v394_v12 = vmul.f32 0.0078125, %v379_v11  ;;  %v1678_v11 = vld [vmem:[#allocation7 + $0x58] sm:$0xff]  }
 0x192   : > { %v402_v13 = vadd.f32 1e-05, %v394_v12  ;;  %v1680_v12 = vld [vmem:[#allocation7 + $0xd8] sm:$0xff]  }
 0x193   : > { %v381_v14 = vpop.xlane.xlu1 %380  ;;  %v383_v15 = vpop.xlane.xlu0 %382 }
 0x194   : > { %1698 = vrsqrt.f32 %v402_v13  ;;  %v395_v16 = vmul.f32 0.0078125, %v381_v14  ;;  %v396_v17 = vmul.f32 0.0078125, %v383_v15 }
 0x196   : > { %v403_v20 = vadd.f32 1e-05, %v395_v16  ;;  %v404_v21 = vadd.f32 1e-05, %v396_v17  ;;  %v1679_v16 = vld [vmem:[#allocation7 + $0x18] sm:$0xff]  }
 0x197   : > { %v385_v22 = vpop.xlane.xlu1 %384  ;;  %v387_v23 = vpop.xlane.xlu0 %386  ;;  %v1681_v17 = vld [vmem:[#allocation7 + $0x98] sm:$0xff]  }
 0x198   : > { %1700 = vrsqrt.f32 %v403_v20  ;;  %v397_v24 = vmul.f32 0.0078125, %v385_v22  ;;  %v398_v28 = vmul.f32 0.0078125, %v387_v23  ;;  %v1682_v20 = vld [vmem:[#allocation7 + $0x60] sm:$0xff]  }
 0x199   : > { %1702 = vrsqrt.f32 %v404_v21  ;;  %v1684_v21 = vld [vmem:[#allocation7 + $0xe0] sm:$0xff]  }
 0x19a   : > { %v405_v27 = vadd.f32 1e-05, %v397_v24  ;;  %v406_v32 = vadd.f32 1e-05, %v398_v28  ;;  %v1683_v28 = vld [vmem:[#allocation7 + $0x20] sm:$0xff]  }
 0x19b   : > { %v389_v29 = vpop.xlane.xlu1 %388  ;;  %v391_v36 = vpop.xlane.xlu0 %390 }
 0x19c   : > { %1704 = vrsqrt.f32 %v405_v27  ;;  %v399_v30 = vmul.f32 0.0078125, %v389_v29  ;;  %v400_v44 = vmul.f32 0.0078125, %v391_v36  ;;  %v1685_v29 = vld [vmem:[#allocation7 + $0xa0] sm:$0xff]  }
 0x19e   : > { %v1699_v31 = vpop.eup %1698  ;;  %v407_v35 = vadd.f32 1e-05, %v399_v30  ;;  %v408_v51 = vadd.f32 1e-05, %v400_v44  ;;  %v1688_v30 = vld [vmem:[#allocation7 + $0xe8] sm:$0xff]   ;;  %v1696_v44 = vld [vmem:[#allocation7 + $0xf8] sm:$0xff]  }
 0x19f   : > { %v393_v37 = vpop.xlane.xlu1 %392  ;;  %v418_v38 = vmul.f32 %v1699_v31, %v2103_v18  ;;  %v2148_v18 = vld [vmem:[%s2297_s2] ss:$0 sm:$0xff] }
 0x1a0   : > { %1706 = vrsqrt.f32 %v407_v35  ;;  %v401_v39 = vmul.f32 0.0078125, %v393_v37  ;;  %v1689_v37 = vld [vmem:[#allocation7 + $0xa8] sm:$0xff]  }
 0x1a1   : > { %1708 = vrsqrt.f32 %v406_v32  ;;  %v433_v46 = vmul.f32 %v2141_v40, %v418_v38  ;;  %v1687_v32 = vld [vmem:[#allocation7 + $0x28] sm:$0xff]   ;;  %v1690_v38 = vld [vmem:[#allocation7 + $0x70] sm:$0xff]  }
 0x1a2   : > { %v1701_v43 = vpop.eup %1700  ;;  %v409_v48 = vadd.f32 1e-05, %v401_v39  ;;  %v1692_v39 = vld [vmem:[#allocation7 + $0xf0] sm:$0xff]  }
 0x1a3   : > { %v419_v45 = vmul.f32 %v1701_v43, %v2109_v25  ;;  %v1703_v47 = vpop.eup %1702  ;;  %v448_v52 = vadd.f32 %v2148_v18, %v433_v46  ;;  %v1693_v43 = vld [vmem:[#allocation7 + $0xb0] sm:$0xff]   ;;  %v1697_v46 = vld [vmem:[#allocation7 + $0xb8] sm:$0xff]  }
 0x1a4   : > { %v420_v54 = vmul.f32 %v1703_v47, %v2105_v19  ;;  %1710 = vrsqrt.f32 %v409_v48  ;;  %v494_v47 = vlaneseq }
 0x1a5   : > { %v434_v49 = vmul.f32 %v2141_v40, %v419_v45  ;;  %1712 = vrsqrt.f32 %v408_v51  ;;  %v1695_v45 = vld [vmem:[#allocation7 + $0x38] sm:$0xff]  }
 0x1a6   : > { %v1705_v50 = vpop.eup %1704  ;;  %v435_v62 = vmul.f32 %v2141_v40, %v420_v54  ;;  %v495_v48 = vshrl.u32 %v494_v47, 7 }
 0x1a7   : > { %v449_v53 = vadd.f32 %v2148_v18, %v434_v49  ;;  %v421_v25 = vmul.f32 %v1705_v50, %v2111_v26  ;;  %v492_v50 = vld [vmem:[%s2299_s4] sm:$0xf] }
 0x1a8   : > { %v450_v4 = vadd.f32 %v2148_v18, %v435_v62  ;;  %v504_v49 = vsub.s32 2, %v495_v48  ;;  %v500_v51 = vsub.s32 1, %v495_v48 }
 0x1a9   : > { %v456_v55 = vpack.c.bf16 %v449_v53, %v448_v52  ;;  %v436_v56 = vmul.f32 %v2141_v40, %v421_v25  ;;  %v508_v52 = vsub.s32 3, %v495_v48 }
 0x1aa   : > { %v1707_v59 = vpop.eup %1706  ;;  %v2182_v54 = vrot.slane %v492_v50, %v504_v49  ;;  %v2184_v25 = vrot.slane %v492_v50, %v500_v51 }
 0x1ab   : > { %707 = vmatmul.mubr.bf16.vlgmr.msra.gmra.mrb[0].mxu0 %v456_v55  ;;  %780 = vmatmul.mubr.bf16.vlgmr.msra.gmra.mrb[0].mxu1 %v456_v55  ;;  %v1709_v63 = vpop.eup %1708  ;;  %v451_v19 = vadd.f32 %v2148_v18, %v436_v56  ;;  %v423_v26 = vmul.f32 %v1707_v59, %v2119_v34  ;;  %v2186_v55 = vrot.slane %v492_v50, %v508_v52 }
 0x1ac   : > { %716 = vmatprep.mubr.bf16.mxu0 %v1881_v8  ;;  %789 = vmatprep.mubr.bf16.mxu1 %v1881_v8  ;;  %v422_v5 = vmul.f32 %v1709_v63, %v2117_v33 }
 0x1ad   : > { %1463 = vmatpush3.bf16.msra.mxu0 %v1667_v57  ;;  %1503 = vmatpush3.bf16.msra.mxu1 %v1669_v58  ;;  %v457_v6 = vpack.c.bf16 %v451_v19, %v450_v4  ;;  %v438_v7 = vmul.f32 %v2141_v40, %v423_v26 }
 0x1ae   : > { %1464 = vmatprep.subr.bf16.mxu0 %v1670_v60  ;;  %1504 = vmatprep.subr.bf16.mxu1 %v1672_v61  ;;  %v1711_v34 = vpop.eup %1710  ;;  %v437_v13 = vmul.f32 %v2141_v40, %v422_v5 }
 0x1af   : > { %v1713_v14 = vpop.eup %1712  ;;  %v453_v33 = vadd.f32 %v2148_v18, %v438_v7  ;;  %v425_v15 = vmul.f32 %v1711_v34, %v2127_v42  ;;  %v1686_v42 = vld [vmem:[#allocation7 + $0x68] sm:$0xff]  }
 0x1b0   : > { %v452_v22 = vadd.f32 %v2148_v18, %v437_v13  ;;  %v424_v23 = vmul.f32 %v1713_v14, %v2125_v41 }
 0x1b1   : > { %1465 = vmatpush3.bf16.msra.mxu0 %v1671_v0  ;;  %1505 = vmatpush3.bf16.msra.mxu1 %v1673_v1  ;;  %v440_v27 = vmul.f32 %v2141_v40, %v425_v15 }
 0x1b2   : > { %1466 = vmatprep.subr.bf16.mxu0 %v1674_v2  ;;  %1506 = vmatprep.subr.bf16.mxu1 %v1676_v3  ;;  %v458_v24 = vpack.c.bf16 %v453_v33, %v452_v22  ;;  %v439_v31 = vmul.f32 %v2141_v40, %v424_v23  ;;  %v1691_v40 = vld [vmem:[#allocation7 + $0x30] sm:$0xff]  }
 0x1b3   : > { %717 = vmatmul.mubr.bf16.gmra.mrb[4].mxu0 %v457_v6  ;;  %790 = vmatmul.mubr.bf16.gmra.mrb[4].mxu1 %v457_v6  ;;  %v455_v41 = vadd.f32 %v2148_v18, %v440_v27 }
 0x1b4   : > { %726 = vmatprep.mubr.bf16.mxu0 %v1881_v8  ;;  %799 = vmatprep.mubr.bf16.mxu1 %v1881_v8  ;;  %v454_v35 = vadd.f32 %v2148_v18, %v439_v31  ;;  %v496_v18 = vsub.s32 0, %v495_v48 }
 0x1b5   : > { %1467 = vmatpush3.bf16.msra.mxu0 %v1675_v9  ;;  %1507 = vmatpush3.bf16.msra.mxu1 %v1677_v10 }
 0x1b6   : > { %1468 = vmatprep.subr.bf16.mxu0 %v1678_v11  ;;  %1508 = vmatprep.subr.bf16.mxu1 %v1680_v12  ;;  %v459_v36 = vpack.c.bf16 %v455_v41, %v454_v35  ;;  %v2180_v53 = vrot.slane %v492_v50, %v496_v18 }
 0x1b9   : > { %1469 = vmatpush3.bf16.msra.mxu0 %v1679_v16  ;;  %1509 = vmatpush3.bf16.msra.mxu1 %v1681_v17 }
 0x1ba   : > { %1470 = vmatprep.subr.bf16.mxu0 %v1682_v20  ;;  %1510 = vmatprep.subr.bf16.mxu1 %v1684_v21 }
 0x1bb   : > { %727 = vmatmul.mubr.bf16.gmra.mrb[8].mxu0 %v458_v24  ;;  %800 = vmatmul.mubr.bf16.gmra.mrb[8].mxu1 %v458_v24 }
 0x1bc   : > { %736 = vmatprep.mubr.bf16.mxu0 %v1881_v8  ;;  %809 = vmatprep.mubr.bf16.mxu1 %v1881_v8  ;;  %v1694_v8 = vld [vmem:[#allocation7 + $0x78] sm:$0xff]  }
 0x1bd   : > { %1471 = vmatpush3.bf16.msra.mxu0 %v1683_v28  ;;  %1511 = vmatpush3.bf16.msra.mxu1 %v1685_v29 }
 0x1be   : > { %1472 = vmatprep.subr.bf16.mxu0 %v1686_v42  ;;  %1512 = vmatprep.subr.bf16.mxu1 %v1688_v30 }
 0x1c1   : > { %1473 = vmatpush3.bf16.msra.mxu0 %v1687_v32  ;;  %1513 = vmatpush3.bf16.msra.mxu1 %v1689_v37 }
 0x1c2   : > { %1474 = vmatprep.subr.bf16.mxu0 %v1690_v38  ;;  %1514 = vmatprep.subr.bf16.mxu1 %v1692_v39 }
 0x1c3   : > { %737 = vmatmul.mubr.bf16.gmra.mrb[12].mxu0 %v459_v36  ;;  %810 = vmatmul.mubr.bf16.gmra.mrb[12].mxu1 %v459_v36 }
 0x1c5   : > { %1475 = vmatpush3.bf16.msra.mxu0 %v1691_v40  ;;  %1515 = vmatpush3.bf16.msra.mxu1 %v1693_v43 }
 0x1c6   : > { %1476 = vmatprep.subr.bf16.mxu0 %v1694_v8  ;;  %1516 = vmatprep.subr.bf16.mxu1 %v1696_v44 }
 0x1c9   : > { %1477 = vmatpush3.bf16.msra.mxu0 %v1695_v45  ;;  %1517 = vmatpush3.bf16.msra.mxu1 %v1697_v46 }
 0x27e   : > { %v708_v56 = vpop.f32.mrb[0].mxu0  ;;  %v781_v57 = vpop.f32.mrb[0].mxu1 }
 0x27f   : > { %v709_v58 = vadd.f32 %v708_v56, %v2180_v53  ;;  %v782_v59 = vadd.f32 %v781_v57, %v2182_v54  ;;  %v710_v60 = vpop.f32.mrb[1].mxu0  ;;  %v783_v61 = vpop.f32.mrb[1].mxu1 }
 0x280   : > { %v711_v62 = vadd.f32 %v710_v60, %v2184_v25  ;;  %v784_v63 = vadd.f32 %v783_v61, %v2186_v55  ;;  %v712_v19 = vpop.f32.mrb[2].mxu0  ;;  %v785_v26 = vpop.f32.mrb[2].mxu1 }
 0x281   : > { %v713_v0 = vadd.f32 %v712_v19, %v2180_v53  ;;  %v786_v1 = vadd.f32 %v785_v26, %v2182_v54  ;;  %v714_v2 = vpop.f32.mrb[3].mxu0  ;;  %v787_v3 = vpop.f32.mrb[3].mxu1  ;;  %v820_v6 = vmax.f32 %v709_v58, 0.0  ;;  %v822_v7 = vmax.f32 %v782_v59, 0.0 }
 0x282   : > { %v715_v4 = vadd.f32 %v714_v2, %v2184_v25  ;;  %v788_v5 = vadd.f32 %v787_v3, %v2186_v55  ;;  %v821_v34 = vmax.f32 %v711_v62, 0.0  ;;  %v823_v11 = vmax.f32 %v784_v63, 0.0 }
 0x283   : > { %v824_v9 = vmax.f32 %v713_v0, 0.0  ;;  %v826_v10 = vmax.f32 %v786_v1, 0.0 }
 0x284   : > { %v825_v12 = vmax.f32 %v715_v4, 0.0  ;;  %v827_v13 = vmax.f32 %v788_v5, 0.0 }
 0x285   : > { %v852_v14 = vpack.c.bf16 %v824_v9, %v820_v6  ;;  %v854_v33 = vpack.c.bf16 %v826_v10, %v822_v7 }
 0x286   : > { %v853_v15 = vpack.c.bf16 %v825_v12, %v821_v34  ;;  %v855_v16 = vpack.c.bf16 %v827_v13, %v823_v11  ;;  %v718_v17 = vpop.f32.mrb[4].mxu0  ;;  %v791_v20 = vpop.f32.mrb[4].mxu1 }
 0x287   : > { %v719_v21 = vadd.f32 %v718_v17, %v2180_v53  ;;  %v792_v22 = vadd.f32 %v791_v20, %v2182_v54  ;;  %v720_v23 = vpop.f32.mrb[5].mxu0  ;;  %v793_v24 = vpop.f32.mrb[5].mxu1 }
 0x288   : > { %v721_v27 = vadd.f32 %v720_v23, %v2184_v25  ;;  %v794_v28 = vadd.f32 %v793_v24, %v2186_v55  ;;  %v722_v29 = vpop.f32.mrb[6].mxu0  ;;  %v795_v42 = vpop.f32.mrb[6].mxu1  ;;  %1163 = vmatprep.mubr.bf16.mxu0 %v853_v15  ;;  %1228 = vmatprep.mubr.bf16.mxu1 %v855_v16 }
 0x289   : > { %v723_v30 = vadd.f32 %v722_v29, %v2180_v53  ;;  %v796_v31 = vadd.f32 %v795_v42, %v2182_v54  ;;  %v724_v41 = vpop.f32.mrb[7].mxu0  ;;  %v797_v32 = vpop.f32.mrb[7].mxu1  ;;  %1164 = vmatmul.mubr.bf16.vlgmr.msra.gmra.mrb[16].mxu0 %v852_v14  ;;  %1229 = vmatmul.mubr.bf16.vlgmr.msra.gmra.mrb[16].mxu1 %v854_v33  ;;  %v828_v37 = vmax.f32 %v719_v21, 0.0  ;;  %v830_v38 = vmax.f32 %v792_v22, 0.0 }
 0x28a   : > { %v725_v35 = vadd.f32 %v724_v41, %v2184_v25  ;;  %v798_v36 = vadd.f32 %v797_v32, %v2186_v55  ;;  %v829_v43 = vmax.f32 %v721_v27, 0.0  ;;  %v831_v8 = vmax.f32 %v794_v28, 0.0 }
 0x28b   : > { %v832_v39 = vmax.f32 %v723_v30, 0.0  ;;  %v834_v40 = vmax.f32 %v796_v31, 0.0 }
 0x28c   : > { %v833_v44 = vmax.f32 %v725_v35, 0.0  ;;  %v835_v45 = vmax.f32 %v798_v36, 0.0 }
 0x28d   : > { %v856_v46 = vpack.c.bf16 %v832_v39, %v828_v37  ;;  %v858_v47 = vpack.c.bf16 %v834_v40, %v830_v38 }
 0x28e   : > { %v857_v48 = vpack.c.bf16 %v833_v44, %v829_v43  ;;  %v859_v18 = vpack.c.bf16 %v835_v45, %v831_v8  ;;  %v728_v49 = vpop.f32.mrb[8].mxu0  ;;  %v801_v50 = vpop.f32.mrb[8].mxu1 }
 0x28f   : > { %v729_v51 = vadd.f32 %v728_v49, %v2180_v53  ;;  %v802_v52 = vadd.f32 %v801_v50, %v2182_v54  ;;  %v730_v56 = vpop.f32.mrb[9].mxu0  ;;  %v803_v57 = vpop.f32.mrb[9].mxu1 }
 0x290   : > { %v731_v58 = vadd.f32 %v730_v56, %v2184_v25  ;;  %v804_v59 = vadd.f32 %v803_v57, %v2186_v55  ;;  %v732_v60 = vpop.f32.mrb[10].mxu0  ;;  %v805_v61 = vpop.f32.mrb[10].mxu1  ;;  %1171 = vmatprep.mubr.bf16.mxu0 %v857_v48  ;;  %1236 = vmatprep.mubr.bf16.mxu1 %v859_v18 }
 0x291   : > { %v733_v62 = vadd.f32 %v732_v60, %v2180_v53  ;;  %v806_v63 = vadd.f32 %v805_v61, %v2182_v54  ;;  %v734_v19 = vpop.f32.mrb[11].mxu0  ;;  %v807_v26 = vpop.f32.mrb[11].mxu1  ;;  %1172 = vmatmul.mubr.bf16.gmra.mrb[20].mxu0 %v856_v46  ;;  %1237 = vmatmul.mubr.bf16.gmra.mrb[20].mxu1 %v858_v47  ;;  %v836_v2 = vmax.f32 %v729_v51, 0.0  ;;  %v838_v3 = vmax.f32 %v802_v52, 0.0 }
 0x292   : > { %v735_v0 = vadd.f32 %v734_v19, %v2184_v25  ;;  %v808_v1 = vadd.f32 %v807_v26, %v2186_v55  ;;  %v837_v6 = vmax.f32 %v731_v58, 0.0  ;;  %v839_v7 = vmax.f32 %v804_v59, 0.0 }
 0x293   : > { %v840_v4 = vmax.f32 %v733_v62, 0.0  ;;  %v842_v5 = vmax.f32 %v806_v63, 0.0 }
 0x294   : > { %v841_v9 = vmax.f32 %v735_v0, 0.0  ;;  %v843_v10 = vmax.f32 %v808_v1, 0.0 }
 0x295   : > { %v860_v34 = vpack.c.bf16 %v840_v4, %v836_v2  ;;  %v862_v11 = vpack.c.bf16 %v842_v5, %v838_v3 }
 0x296   : > { %v861_v12 = vpack.c.bf16 %v841_v9, %v837_v6  ;;  %v863_v13 = vpack.c.bf16 %v843_v10, %v839_v7  ;;  %v738_v14 = vpop.f32.mrb[12].mxu0  ;;  %v811_v33 = vpop.f32.mrb[12].mxu1 }
 0x297   : > { %v739_v15 = vadd.f32 %v738_v14, %v2180_v53  ;;  %v812_v16 = vadd.f32 %v811_v33, %v2182_v54  ;;  %v740_v17 = vpop.f32.mrb[13].mxu0  ;;  %v813_v20 = vpop.f32.mrb[13].mxu1 }
 0x298   : > { %v741_v21 = vadd.f32 %v740_v17, %v2184_v25  ;;  %v814_v22 = vadd.f32 %v813_v20, %v2186_v55  ;;  %v742_v23 = vpop.f32.mrb[14].mxu0  ;;  %v815_v24 = vpop.f32.mrb[14].mxu1  ;;  %1179 = vmatprep.mubr.bf16.mxu0 %v861_v12  ;;  %1244 = vmatprep.mubr.bf16.mxu1 %v863_v13 }
 0x299   : > { %v743_v27 = vadd.f32 %v742_v23, %v2180_v53  ;;  %v816_v28 = vadd.f32 %v815_v24, %v2182_v54  ;;  %v744_v29 = vpop.f32.mrb[15].mxu0  ;;  %v817_v42 = vpop.f32.mrb[15].mxu1  ;;  %1180 = vmatmul.mubr.bf16.gmra.mrb[24].mxu0 %v860_v34  ;;  %1245 = vmatmul.mubr.bf16.gmra.mrb[24].mxu1 %v862_v11  ;;  %v844_v41 = vmax.f32 %v739_v15, 0.0  ;;  %v846_v32 = vmax.f32 %v812_v16, 0.0 }
 0x29a   : > { %v745_v30 = vadd.f32 %v744_v29, %v2184_v25  ;;  %v818_v31 = vadd.f32 %v817_v42, %v2186_v55  ;;  %v845_v37 = vmax.f32 %v741_v21, 0.0  ;;  %v847_v38 = vmax.f32 %v814_v22, 0.0  ;;  %v2223_v55 = vld [vmem:[%s2301_s6] ss:$0 sm:$0xff] }
 0x29b   : > { %v848_v35 = vmax.f32 %v743_v27, 0.0  ;;  %v850_v36 = vmax.f32 %v816_v28, 0.0 }
 0x29c   : > { %v849_v39 = vmax.f32 %v745_v30, 0.0  ;;  %v851_v40 = vmax.f32 %v818_v31, 0.0 }
 0x29d   : > { %v864_v43 = vpack.c.bf16 %v848_v35, %v844_v41  ;;  %v866_v53 = vpack.c.bf16 %v850_v36, %v846_v32 }
 0x29e   : > { %v865_v8 = vpack.c.bf16 %v849_v39, %v845_v37  ;;  %v867_v54 = vpack.c.bf16 %v851_v40, %v847_v38 }
 0x2a0   : > { %1187 = vmatprep.mubr.bf16.mxu0 %v865_v8  ;;  %1252 = vmatprep.mubr.bf16.mxu1 %v867_v54 }
 0x2a1   : > { %1188 = vmatmul.mubr.bf16.gmra.mrb[28].mxu0 %v864_v43  ;;  %1253 = vmatmul.mubr.bf16.gmra.mrb[28].mxu1 %v866_v53 }
 0x35c   : > { %v1478_v44 = vpop.f32.mrb[16].mxu0  ;;  %v1518_v25 = vpop.f32.mrb[16].mxu1 }
 0x35d   : > { %v1479_v45 = vpop.f32.mrb[17].mxu0  ;;  %v1519_v46 = vpop.f32.mrb[17].mxu1 }
 0x35e   : > { %v1480_v47 = vadd.f32 %v1479_v45, %v1478_v44  ;;  %v1520_v48 = vadd.f32 %v1519_v46, %v1518_v25  ;;  %v1481_v18 = vpop.f32.mrb[18].mxu0  ;;  %v1521_v49 = vpop.f32.mrb[18].mxu1 }
 0x35f   : > { %v1482_v50 = vpop.f32.mrb[19].mxu0  ;;  %v1522_v51 = vpop.f32.mrb[19].mxu1 }
 0x360   : > { %v1166_v52 = vadd.f32 %v1480_v47, %v2223_v55  ;;  %v1483_v56 = vadd.f32 %v1482_v50, %v1481_v18  ;;  %v1523_v57 = vadd.f32 %v1522_v51, %v1521_v49 }
 0x362   : > { %v1231_v58 = vadd.f32 %v1520_v48, %v1166_v52  ;;  %v1169_v59 = vadd.f32 %v1483_v56, %v2223_v55 }
 0x364   : > { %1261 = vst [vmem:[%s2229_s15] sm:$0xff] %v1231_v58  ;;  %v1234_v60 = vadd.f32 %v1523_v57, %v1169_v59  ;;  %v1484_v61 = vpop.f32.mrb[20].mxu0  ;;  %v1524_v62 = vpop.f32.mrb[20].mxu1 }
 0x365   : > { %v1485_v63 = vpop.f32.mrb[21].mxu0  ;;  %v1525_v19 = vpop.f32.mrb[21].mxu1 }
 0x366   : > { %1262 = vst [vmem:[%s2229_s15 + $0x8] sm:$0xff] %v1234_v60  ;;  %v1486_v26 = vadd.f32 %v1485_v63, %v1484_v61  ;;  %v1526_v0 = vadd.f32 %v1525_v19, %v1524_v62  ;;  %v1487_v1 = vpop.f32.mrb[22].mxu0  ;;  %v1527_v2 = vpop.f32.mrb[22].mxu1 }
 0x367   : > { %v1488_v3 = vpop.f32.mrb[23].mxu0  ;;  %v1528_v4 = vpop.f32.mrb[23].mxu1 }
 0x368   : > { %v1174_v5 = vadd.f32 %v1486_v26, %v2223_v55  ;;  %v1489_v6 = vadd.f32 %v1488_v3, %v1487_v1  ;;  %v1529_v7 = vadd.f32 %v1528_v4, %v1527_v2 }
 0x36a   : > { %v1239_v9 = vadd.f32 %v1526_v0, %v1174_v5  ;;  %v1177_v10 = vadd.f32 %v1489_v6, %v2223_v55 }
 0x36c   : > { %1263 = vst [vmem:[%s2229_s15 + $0x10] sm:$0xff] %v1239_v9  ;;  %v1242_v34 = vadd.f32 %v1529_v7, %v1177_v10  ;;  %v1490_v11 = vpop.f32.mrb[24].mxu0  ;;  %v1530_v12 = vpop.f32.mrb[24].mxu1 }
 0x36d   : > { %v1491_v13 = vpop.f32.mrb[25].mxu0  ;;  %v1531_v14 = vpop.f32.mrb[25].mxu1 }
 0x36e   : > { %1264 = vst [vmem:[%s2229_s15 + $0x18] sm:$0xff] %v1242_v34  ;;  %v1492_v33 = vadd.f32 %v1491_v13, %v1490_v11  ;;  %v1532_v15 = vadd.f32 %v1531_v14, %v1530_v12  ;;  %v1493_v16 = vpop.f32.mrb[26].mxu0  ;;  %v1533_v17 = vpop.f32.mrb[26].mxu1 }
 0x36f   : > { %v1494_v20 = vpop.f32.mrb[27].mxu0  ;;  %v1534_v21 = vpop.f32.mrb[27].mxu1 }
 0x370   : > { %v1182_v22 = vadd.f32 %v1492_v33, %v2223_v55  ;;  %v1495_v23 = vadd.f32 %v1494_v20, %v1493_v16  ;;  %v1535_v24 = vadd.f32 %v1534_v21, %v1533_v17 }
 0x372   : > { %v1247_v27 = vadd.f32 %v1532_v15, %v1182_v22  ;;  %v1185_v28 = vadd.f32 %v1495_v23, %v2223_v55 }
 0x374   : > { %1265 = vst [vmem:[%s2229_s15 + $0x20] sm:$0xff] %v1247_v27  ;;  %v1250_v29 = vadd.f32 %v1535_v24, %v1185_v28  ;;  %v1496_v42 = vpop.f32.mrb[28].mxu0  ;;  %v1536_v30 = vpop.f32.mrb[28].mxu1 }
 0x375   : > { %v1497_v31 = vpop.f32.mrb[29].mxu0  ;;  %v1537_v41 = vpop.f32.mrb[29].mxu1 }
 0x376   : > { %1266 = vst [vmem:[%s2229_s15 + $0x28] sm:$0xff] %v1250_v29  ;;  %v1498_v32 = vadd.f32 %v1497_v31, %v1496_v42  ;;  %v1538_v35 = vadd.f32 %v1537_v41, %v1536_v30  ;;  %v1499_v36 = vpop.f32.mrb[30].mxu0  ;;  %v1539_v37 = vpop.f32.mrb[30].mxu1 }
 0x377   : > { %v1500_v38 = vpop.f32.mrb[31].mxu0  ;;  %v1540_v39 = vpop.f32.mrb[31].mxu1 }
 0x378   : > { %v1190_v40 = vadd.f32 %v1498_v32, %v2223_v55  ;;  %v1501_v43 = vadd.f32 %v1500_v38, %v1499_v36  ;;  %v1541_v53 = vadd.f32 %v1540_v39, %v1539_v37 }
 0x37a   : > { %v1255_v8 = vadd.f32 %v1538_v35, %v1190_v40  ;;  %v1193_v54 = vadd.f32 %v1501_v43, %v2223_v55 }
 0x37c   : > { %1267 = vst [vmem:[%s2229_s15 + $0x30] sm:$0xff] %v1255_v8  ;;  %v1258_v44 = vadd.f32 %v1541_v53, %v1193_v54 }
 0x37e   : > { %1268 = vst [vmem:[%s2229_s15 + $0x38] sm:$0xff] %v1258_v44 }
 0x37f   : > { %1813 = shalt.err (!%p1810_p7)
}
 0x380   : > { %s1814_s10 = scalar_lea.hbm %s2250_s30, 1024  ;;  %s1818_s15 = scalar_lea.hbm %s2302_s7, 4096 }
 0x381   : > { %p1815_p9 = scmp.ne.s32.totalorder %s2250_s30, %s1814_s10  ;;  %p1819_p5 = scmp.lt.u32.totalorder %s2250_s30, %s2302_s7 }
 0x382   : > { %p1820_p10 = scmp.lt.u32.totalorder %s1818_s15, %s1814_s10  ;;  %p1822_p1 = scmp.lt.u32.totalorder %s1814_s10, %s2250_s30 }
 0x383   : > { %p1816_p12 = pnand %p1815_p9, %p2040_p6 }
 0x384   : > { %p1821_p11 = por %p1820_p10, %p1819_p5 }
 0x385   : > { %p1817_p0 = pneg %p1816_p12 }
 0x386   : > { %p1823_p2 = por %p1822_p1, %p1821_p11 }
 0x388   : > { %p1824_p4 = pnand %p1823_p2, %p1817_p0 }
 0x38a   : > { %1827 = shalt.err (!%p1824_p4)
}
 0x38b   : > { %s1883_s22 = smov 128   ;;  %s1884_s11 = smov 8  }
 0x38c   : > { %1552 = dma.vmem_to_hbm [thread:$0]  (%p2040_p6), %s2244_s14, 1024, %s2250_s30, %s1270_s9, %s1883_s22, %s1883_s22, %s1884_s11  }
 0x38d PF: > { %p1574_p8 = scmp.ge.s32.totalorder %s1870_s27, 2  ;;  %s1298_s28 = sand.u32 1, %s1858_s24  }
 0x38e   : > { %p2317_p13 = scmp.ne.s32.totalorder %s2307_s8, 0  ;;  %s1299_s23 = scalar_lea.sflag [#allocation4], %s1298_s28 }
 0x390   : > { %p1566_p3 = pnand %p1574_p8, %p2317_p13 }
 0x392   : > { %1853 = dma.done.wait (!%p1566_p3), %s1299_s23, 1024  }
 0x393   : > { %1855 = vsyncadd (!%p1566_p3), %s1299_s23, 4294966272  ;;  %p21_p7 = scmp.ge.s32.totalorder %s2027_s13, 6   ;;  %s2318_s24 = smov %s1862_s25 }
 0x394   : > { %s2319_s25 = smov %s1866_s26  ;;  %s2320_s26 = smov %s2036_s17 }
 0x395   : > { %s2321_s27 = smov %s2027_s13  ;;  %23 = sbr.rel (!%p21_p7) target bundleno = 6 (0x6), region = 101 }
 0x39c   :  { %1304 = vsyncpa [#allocation3], 1 }
 0x39d   :  { %1306 = vsyncpa [#allocation3 + $0x1], 1 }
 0x39e   :  { %1307 = vsyncpa [#allocation6], 1 }
 0x39f   :  { %1308 = vsyncpa [#allocation4], 1 }
 0x3a0   :  { %1310 = vsyncpa [#allocation4 + $0x1], 1 }

// kernel: tpu_custom_call.1
= control target key start
LH: loop header
LB: loop body
LE: loop exit
PB: predicated region body
PF: predicated region fallthrough
CT: control target
= control target key end

     0   :  { %12 = vsyncpa [#allocation3], 0  ;;  %s2295_s0 = inlined_call_operand.hbm [shape: f32[256,128], index: 0, kind: input, shape index: {}]   ;;  %s2296_s1 = inlined_call_operand.vmem [shape: f32[1,128], index: 1, kind: input, shape index: {}]   ;;  %s2297_s2 = inlined_call_operand.vmem [shape: f32[1,128], index: 2, kind: input, shape index: {}]   ;;  %s2298_s3 = inlined_call_operand.hbm [shape: bf16[128,512], index: 3, kind: input, shape index: {}]   ;;  %s2299_s4 = inlined_call_operand.vmem [shape: f32[1,512], index: 4, kind: input, shape index: {}]   ;;  %s2300_s5 = inlined_call_operand.hbm [shape: bf16[512,128], index: 5, kind: input, shape index: {}]   ;;  %s2301_s6 = inlined_call_operand.vmem [shape: f32[1,128], index: 6, kind: input, shape index: {}]   ;;  %s2302_s7 = inlined_call_operand.hbm [shape: f32[256,128], index: 7, kind: output, shape index: {}]  }
   0x1   :  { %14 = vsyncpa [#allocation3 + $0x1], 0 }
   0x2   :  { %15 = vsyncpa [#allocation6], 0 }
   0x3   :  { %16 = vsyncpa [#allocation4], 0 }
   0x4   :  { %18 = vsyncpa [#allocation4 + $0x1], 0  ;;  %s1925_s24 = smov 0   ;;  %s1927_s25 = smov 0  }
   0x5   :  { %s1929_s26 = smov 0   ;;  %s1931_s27 = smov 0  }
   0x6 LB: > { %s1946_s28 = sadd.s32 4294967295, %s1870_s27   ;;  %s1375_s29 = sadd.s32 4294967294, %s1870_s27   ;;  %s1870_s27 = sphi %s1931_s27, %s2321_s27   ;;  %s1866_s26 = sphi %s1929_s26, %s2320_s26   ;;  %s1862_s25 = sphi %s1927_s25, %s2319_s25   ;;  %s1858_s24 = sphi %s1925_s24, %s2318_s24  }
   0x7   : > { %p44_p0 = scmp.ne.s32.totalorder %s1862_s25, %s1858_s24  ;;  %p2303_p1 = scmp.eq.s32.totalorder %s1946_s28, 0 }
   0x8   : > { %p200_p3 = scmp.eq.s32.totalorder %s1375_s29, 3  ;;  %p1376_p5 = scmp.ge.s32.totalorder %s1870_s27, 1 }
   0x9   : > { %p1955_p4 = por %p2303_p1, %p44_p0  ;;  %p207_p7 = scmp.lt.s32.totalorder %s1870_s27, 5 }
   0xa   : > { %p1960_p6 = por %p200_p3, %p44_p0  ;;  %s1872_s10 = smov [#allocation5]  }
   0xb   : > { %s2306_s30 = scalar_select %p1955_p4, 1, 0 }
   0xc   : > { %s2307_s8 = scalar_select %p1960_p6, 1, 0 }
   0xd   : > { %p1965_p8 = pnand %p1376_p5, %p207_p7  ;;  %s225_s11 = sshll.u32 %s1872_s10, 4  ;;  %s226_s11 = int_to_ptr.vmem [resolvable:$true] %s225_s11 }
   0xe   : > { %s1873_s13 = smov [#allocation7]   ;;  %s1714_s17 = scalar_lea.hbm %s2298_s3, 4096 }
   0xf   : > { %s2308_s9 = scalar_select %p1965_p8, 1, 0 }
  0x10   : > { %p1554_p9 = pneg %p1965_p8  ;;  %s241_s14 = sshll.u32 %s1873_s13, 4  ;;  %s1977_s14 = int_to_ptr.vmem [resolvable:$true] %s241_s14 }
  0x11   : > { %p1715_p11 = scmp.ne.s32.totalorder %s2298_s3, %s1714_s17  ;;  %p1721_p3 = scmp.lt.u32.totalorder %s1714_s17, %s2298_s3 }
  0x12   : > { %p1973_p10 = pnand %p1554_p9, %p2303_p1 }
  0x14   : > { %p1716_p12 = pneg %p1973_p10 }
  0x16   : > { %p1717_p13 = pnand %p1716_p12, %p1715_p11 }
  0x18   : > { %p1718_p0 = pneg %p1717_p13 }
  0x1a   : > { %p1723_p5 = pnand %p1721_p3, %p1718_p0 }
  0x1c   : > { %1726 = shalt.err (!%p1723_p5)
}
  0x1d   : > { %s1727_s22 = scalar_lea.vmem %s226_s11, 4096  ;;  %p1735_p2 = scmp.lt.s32.totalorder %s226_s11, %s226_s11 }
  0x1e   : > { %p1728_p7 = scmp.ne.s32.totalorder %s226_s11, %s1727_s22  ;;  %p1736_p6 = scmp.lt.s32.totalorder %s1727_s22, %s1727_s22 }
  0x20   : > { %p1730_p9 = pnand %p1728_p7, %p1716_p12  ;;  %p1737_p4 = por %p1736_p6, %p1735_p2 }
  0x22   : > { %p1731_p1 = pneg %p1730_p9 }
  0x24   : > { %p1738_p8 = pnand %p1737_p4, %p1731_p1 }
  0x26   : > { %1741 = shalt.err (!%p1738_p8)
}
  0x27   : > { %s1874_s23 = smov 256   ;;  %s1875_s29 = smov 16  }
  0x28   : > { %1557 = dma.hbm_to_vmem [thread:$0]  (!%p1973_p10), %s2298_s3, 4096, %s226_s11, [#allocation6], %s1874_s23, %s1874_s23, %s1875_s29  }
  0x29   : > { %s1742_s17 = scalar_lea.hbm %s2300_s5, 4096 }
  0x2a   : > { %p1743_p11 = scmp.ne.s32.totalorder %s2300_s5, %s1742_s17  ;;  %p1749_p4 = scmp.lt.u32.totalorder %s1742_s17, %s2300_s5 }
  0x2c   : > { %p1745_p1 = pnand %p1743_p11, %p1716_p12 }
  0x2e   : > { %p1746_p2 = pneg %p1745_p1 }
  0x30   : > { %p1751_p6 = pnand %p1749_p4, %p1746_p2 }
  0x32   : > { %1754 = shalt.err (!%p1751_p6)
}
  0x33   : > { %s1755_s11 = scalar_lea.vmem %s1977_s14, 4096  ;;  %p1763_p3 = scmp.lt.s32.totalorder %s1977_s14, %s1977_s14 }
  0x34   : > { %p1756_p8 = scmp.ne.s32.totalorder %s1977_s14, %s1755_s11  ;;  %p1764_p5 = scmp.lt.s32.totalorder %s1755_s11, %s1755_s11 }
  0x36   : > { %p1758_p13 = pnand %p1756_p8, %p1716_p12  ;;  %p1765_p7 = por %p1764_p5, %p1763_p3 }
  0x38   : > { %p1759_p0 = pneg %p1758_p13 }
  0x3a   : > { %p1766_p9 = pnand %p1765_p7, %p1759_p0 }
  0x3c   : > { %1769 = shalt.err (!%p1766_p9)
}
  0x3d   : > { %s1876_s22 = smov 64   ;;  %s1877_s23 = smov 4  }
  0x3e   : > { %1560 = dma.hbm_to_vmem [thread:$0]  (!%p1973_p10), %s2300_s5, 4096, %s1977_s14, [#allocation6], %s1876_s22, %s1876_s22, %s1877_s23  }
  0x3f   : > { %s2027_s13 = sadd.s32 1, %s1870_s27   ;;  %s31_s16 = sadd.s32 1, %s1866_s26 }
  0x40   : > { %s28_s15 = ssub.s32 %s1870_s27, %s2027_s13  ;;  %p38_p11 = scmp.ne.s32.totalorder %s1866_s26, %s1862_s25 }
  0x41   : > { %p29_p12 = scmp.eq.s32.totalorder %s28_s15, 0  ;;  %p39_p1 = scmp.eq.s32.totalorder %s1870_s27, 0 }
  0x42   : > { %p2310_p4 = scmp.eq.s32.totalorder %s1946_s28, 3  ;;  %p1571_p8 = scmp.lt.s32.totalorder %s1870_s27, 4 }
  0x43   : > { %s2036_s17 = scalar_select %p29_p12, %s1866_s26, %s31_s16  }
  0x44   : > { %p40_p2 = por %p39_p1, %p38_p11  ;;  %p2040_p6 = por %p2310_p4, %p38_p11 }
  0x45   : > { %s258_s12 = sand.u32 1, %s1866_s26   ;;  %s1460_s14 = sshll.u32 %s1870_s27, 10 }
  0x46   : > { %s1380_s19 = sshll.u32 %s258_s12, 6  ;;  %s2050_s11 = scalar_lea.hbm %s2295_s0, %s1460_s14 }
  0x47   : > { %s262_s22 = scalar_lea.vmem [#allocation2], %s1380_s19  ;;  %p2054_p10 = pnand %p1571_p8, %p40_p2 }
  0x48   : > { %s269_s23 = sshll.u32 %s262_s22, 4  ;;  %s2058_s10 = scalar_lea.sflag [#allocation3], %s258_s12  ;;  %s2052_s23 = int_to_ptr.vmem [resolvable:$true] %s269_s23 }
  0x49   : > { %s1770_s15 = scalar_lea.hbm %s2050_s11, 1024  ;;  %p1772_p0 = pneg %p2054_p10 }
  0x4a   : > { %p1771_p13 = scmp.ne.s32.totalorder %s2050_s11, %s1770_s15  ;;  %s1775_s14 = scalar_lea.hbm %s2295_s0, 4096 }
  0x4b   : > { %p1776_p7 = scmp.lt.u32.totalorder %s2050_s11, %s2295_s0  ;;  %p1777_p9 = scmp.lt.u32.totalorder %s1775_s14, %s1770_s15 }
  0x4c   : > { %p1773_p3 = pnand %p1772_p0, %p1771_p13  ;;  %p1779_p11 = scmp.lt.u32.totalorder %s1770_s15, %s2050_s11 }
  0x4d   : > { %p1778_p12 = por %p1777_p9, %p1776_p7 }
  0x4e   : > { %p1774_p5 = pneg %p1773_p3 }
  0x4f   : > { %p1780_p1 = por %p1779_p11, %p1778_p12 }
  0x51   : > { %p1781_p2 = pnand %p1780_p1, %p1774_p5 }
  0x53   : > { %1784 = shalt.err (!%p1781_p2)
}
  0x54   : > { %s1785_s12 = scalar_lea.vmem %s2052_s23, 1024  ;;  %s1878_s22 = smov [#allocation2]  }
  0x55   : > { %p1786_p4 = scmp.ne.s32.totalorder %s2052_s23, %s1785_s12  ;;  %s1790_s16 = sshll.u32 %s1878_s22, 4  ;;  %s1791_s16 = int_to_ptr.vmem [resolvable:$false] %s1790_s16 }
  0x56   : > { %s1792_s19 = scalar_lea.vmem %s1791_s16, 2048  ;;  %p1793_p3 = scmp.lt.s32.totalorder %s2052_s23, %s1791_s16 }
  0x57   : > { %p1788_p8 = pnand %p1786_p4, %p1772_p0  ;;  %p1794_p7 = scmp.lt.s32.totalorder %s1792_s19, %s1785_s12 }
  0x59   : > { %p1789_p13 = pneg %p1788_p8  ;;  %p1795_p9 = por %p1794_p7, %p1793_p3 }
  0x5b   : > { %p1796_p12 = pnand %p1795_p9, %p1789_p13 }
  0x5d   : > { %1799 = shalt.err (!%p1796_p12)
}
  0x5e   : > { %s1879_s15 = smov 128   ;;  %s1880_s14 = smov 8  }
  0x5f   : > { %1564 = dma.hbm_to_vmem [thread:$0]  (!%p2054_p10), %s2050_s11, 1024, %s2052_s23, %s2058_s10, %s1879_s15, %s1879_s15, %s1880_s14  }
  0x60   : > { %p2313_p0 = scmp.ne.s32.totalorder %s2308_s9, 0 }
  0x61   : > { %s2089_s20 = sand.u32 (!%p2313_p0), 1, %s1862_s25   ;;  %p2314_p5 = scmp.ne.s32.totalorder (!%p2313_p0), %s2306_s30, 0 }
  0x62   : > { %281 = sbr.rel (%p2313_p0) target bundleno = 909 (0x38d), region = 48  ;;  %s1384_s21 = sshll.u32 (!%p2313_p0), %s2089_s20, 6 }
  0x63   : > { %s284_s12 = scalar_lea.sflag (!%p2313_p0), [#allocation3], %s2089_s20  ;;  %s287_s22 = scalar_lea.vmem (!%p2313_p0), [#allocation2], %s1384_s21 }
  0x69   : > { %1845 = dma.done.wait (%p2314_p5), %s284_s12, 1024  }
  0x6a   : > { %1847 = vsyncadd (%p2314_p5), %s284_s12, 4294966272  ;;  %p2315_p10 = scmp.eq.s32.totalorder %s1946_s28, 0 }
  0x6c   : > { %1849 = dma.done.wait (%p2315_p10), [#allocation6], 8192   ;;  %p2316_p11 = pmov %p2315_p10 }
  0x6d   : > { %v329_v0 = vld [vmem:[%s287_s22] sm:$0xff]  ;;  %v331_v1 = vld [vmem:[%s287_s22 + $0x10] sm:$0xff]  ;;  %v330_v2 = vld [vmem:[%s287_s22 + $0x8] sm:$0xff]  ;;  %s2229_s15 = scalar_lea.vmem [#allocation8], %s1384_s21  ;;  %s1461_s21 = sshll.u32 %s1946_s28, 10 }
  0x6e   : > { %1851 = vsyncadd (%p2316_p11), [#allocation6], 4294959104  ;;  %337 = vadd.xlane.f32.xlu0 %v329_v0  ;;  %341 = vadd.xlane.f32.xlu1 %v331_v1  ;;  %v332_v3 = vld [vmem:[%s287_s22 + $0x18] sm:$0xff]  ;;  %v333_v4 = vld [vmem:[%s287_s22 + $0x20] sm:$0xff]  ;;  %s1283_s14 = sshll.u32 %s2229_s15, 4  ;;  %s2250_s30 = scalar_lea.hbm %s2302_s7, %s1461_s21  ;;  %s2244_s14 = int_to_ptr.vmem [resolvable:$true] %s1283_s14 }
  0x6f   : > { %v334_v5 = vld [vmem:[%s287_s22 + $0x28] sm:$0xff]  ;;  %v335_v6 = vld [vmem:[%s287_s22 + $0x30] sm:$0xff]  ;;  %v336_v7 = vld [vmem:[%s287_s22 + $0x38] sm:$0xff]  ;;  %s1270_s9 = scalar_lea.sflag [#allocation4], %s2089_s20  ;;  %s1800_s11 = scalar_lea.vmem %s2244_s14, 1024 }
  0x70   : > { %v1618_v8 = vld [vmem:[#allocation5 + $0x4] ss:$16 sps:$4 sm:$0xff]   ;;  %v1620_v9 = vld [vmem:[#allocation5 + $0xc] ss:$16 sps:$4 sm:$0xff]   ;;  %v1622_v10 = vld [vmem:[#allocation5] ss:$16 sps:$4 sm:$0xff]   ;;  %p1801_p1 = scmp.ne.s32.totalorder %s2244_s14, %s1800_s11 }
  0x71   : > { %v1623_v11 = vld [vmem:[#allocation5 + $0x8] ss:$16 sps:$4 sm:$0xff]   ;;  %v1624_v12 = vld [vmem:[#allocation5 + $0x24] ss:$16 sps:$4 sm:$0xff]   ;;  %v1626_v13 = vld [vmem:[#allocation5 + $0x2c] ss:$16 sps:$4 sm:$0xff]   ;;  %674 = vmatprep.subr.bf16.mxu0 %v1618_v8  ;;  %747 = vmatprep.subr.bf16.mxu1 %v1620_v9 }
  0x72   : > { %339 = vadd.xlane.f32.xlu0 %v330_v2  ;;  %343 = vadd.xlane.f32.xlu1 %v332_v3  ;;  %v1628_v46 = vld [vmem:[#allocation5 + $0x20] ss:$16 sps:$4 sm:$0xff]   ;;  %v1629_v47 = vld [vmem:[#allocation5 + $0x28] ss:$16 sps:$4 sm:$0xff]   ;;  %v1630_v48 = vld [vmem:[#allocation5 + $0x44] ss:$16 sps:$4 sm:$0xff]   ;;  %p1802_p2 = pnand %p1801_p1, %p2040_p6 }
  0x73   : > { %675 = vmatpush1.bf16.msra.mxu0 %v1622_v10  ;;  %748 = vmatpush1.bf16.msra.mxu1 %v1623_v11  ;;  %v1632_v49 = vld [vmem:[#allocation5 + $0x4c] ss:$16 sps:$4 sm:$0xff]   ;;  %v1634_v50 = vld [vmem:[#allocation5 + $0x40] ss:$16 sps:$4 sm:$0xff]   ;;  %v1635_v51 = vld [vmem:[#allocation5 + $0x48] ss:$16 sps:$4 sm:$0xff]  }
  0x74   : > { %676 = vmatprep.subr.bf16.mxu0 %v1624_v12  ;;  %749 = vmatprep.subr.bf16.mxu1 %v1626_v13  ;;  %v1636_v52 = vld [vmem:[#allocation5 + $0x64] ss:$16 sps:$4 sm:$0xff]   ;;  %v1638_v53 = vld [vmem:[#allocation5 + $0x6c] ss:$16 sps:$4 sm:$0xff]   ;;  %v1640_v54 = vld [vmem:[#allocation5 + $0x60] ss:$16 sps:$4 sm:$0xff]   ;;  %p1803_p4 = pneg %p1802_p2 }
  0x75   : > { %v1641_v55 = vld [vmem:[#allocation5 + $0x68] ss:$16 sps:$4 sm:$0xff]   ;;  %v1642_v56 = vld [vmem:[#allocation5 + $0x84] ss:$16 sps:$4 sm:$0xff]   ;;  %v1644_v57 = vld [vmem:[#allocation5 + $0x8c] ss:$16 sps:$4 sm:$0xff]  }
  0x76   : > { %345 = vadd.xlane.f32.xlu0 %v333_v4  ;;  %347 = vadd.xlane.f32.xlu1 %v334_v5  ;;  %v1646_v58 = vld [vmem:[#allocation5 + $0x80] ss:$16 sps:$4 sm:$0xff]   ;;  %v1647_v59 = vld [vmem:[#allocation5 + $0x88] ss:$16 sps:$4 sm:$0xff]   ;;  %v1648_v60 = vld [vmem:[#allocation5 + $0xa4] ss:$16 sps:$4 sm:$0xff]  }
  0x77   : > { %677 = vmatpush1.bf16.msra.mxu0 %v1628_v46  ;;  %750 = vmatpush1.bf16.msra.mxu1 %v1629_v47  ;;  %v1650_v61 = vld [vmem:[#allocation5 + $0xac] ss:$16 sps:$4 sm:$0xff]   ;;  %v1652_v62 = vld [vmem:[#allocation5 + $0xa0] ss:$16 sps:$4 sm:$0xff]   ;;  %v1653_v63 = vld [vmem:[#allocation5 + $0xa8] ss:$16 sps:$4 sm:$0xff]  }
  0x78   : > { %678 = vmatprep.subr.bf16.mxu0 %v1630_v48  ;;  %751 = vmatprep.subr.bf16.mxu1 %v1632_v49  ;;  %v1881_v8 = vmov 0   ;;  %v1666_v9 = vld [vmem:[#allocation7 + $0x40] sm:$0xff]   ;;  %s1882_s28 = smov [#allocation8]  }
  0x79   : > { %706 = vmatprep.mubr.bf16.mxu0 %v1881_v8  ;;  %779 = vmatprep.mubr.bf16.mxu1 %v1881_v8  ;;  %v1668_v10 = vld [vmem:[#allocation7 + $0xc0] sm:$0xff]   ;;  %s1804_s23 = sshll.u32 %s1882_s28, 4  ;;  %s1805_s23 = int_to_ptr.vmem [resolvable:$false] %s1804_s23 }
  0x7a   : > { %349 = vadd.xlane.f32.xlu0 %v335_v6  ;;  %351 = vadd.xlane.f32.xlu1 %v336_v7  ;;  %s1806_s29 = scalar_lea.vmem %s1805_s23, 2048  ;;  %p1807_p8 = scmp.lt.s32.totalorder %s2244_s14, %s1805_s23 }
  0x7b   : > { %679 = vmatpush1.bf16.msra.mxu0 %v1634_v50  ;;  %752 = vmatpush1.bf16.msra.mxu1 %v1635_v51  ;;  %p1808_p13 = scmp.lt.s32.totalorder %s1806_s29, %s1800_s11 }
  0x7c   : > { %680 = vmatprep.subr.bf16.mxu0 %v1636_v52  ;;  %753 = vmatprep.subr.bf16.mxu1 %v1638_v53 }
  0x7d   : > { %p1809_p3 = por %p1808_p13, %p1807_p8 }
  0x7f   : > { %681 = vmatpush1.bf16.msra.mxu0 %v1640_v54  ;;  %754 = vmatpush1.bf16.msra.mxu1 %v1641_v55  ;;  %p1810_p7 = pnand %p1809_p3, %p1803_p4 }
  0x80   : > { %682 = vmatprep.subr.bf16.mxu0 %v1642_v56  ;;  %755 = vmatprep.subr.bf16.mxu1 %v1644_v57  ;;  %v1667_v57 = vld [vmem:[#allocation7] sm:$0xff]  }
  0x83   : > { %683 = vmatpush1.bf16.msra.mxu0 %v1646_v58  ;;  %756 = vmatpush1.bf16.msra.mxu1 %v1647_v59  ;;  %v1669_v58 = vld [vmem:[#allocation7 + $0x80] sm:$0xff]  }
  0x84   : > { %684 = vmatprep.subr.bf16.mxu0 %v1648_v60  ;;  %757 = vmatprep.subr.bf16.mxu1 %v1650_v61  ;;  %v1670_v60 = vld [vmem:[#allocation7 + $0x48] sm:$0xff]  }
  0x85   : > { %v1672_v61 = vld [vmem:[#allocation7 + $0xc8] sm:$0xff]  }
  0x87   : > { %685 = vmatpush1.bf16.msra.mxu0 %v1652_v62  ;;  %758 = vmatpush1.bf16.msra.mxu1 %v1653_v63 }
  0xfb   : > { %v338_v14 = vpop.xlane.xlu0 %337  ;;  %v342_v15 = vpop.xlane.xlu1 %341 }
  0xfc   : > { %v354_v16 = vmul.f32 0.0078125, %v338_v14  ;;  %v356_v17 = vmul.f32 0.0078125, %v342_v15 }
  0xfe   : > { %v2103_v18 = vsub.f32 %v329_v0, %v354_v16  ;;  %v2105_v19 = vsub.f32 %v331_v1, %v356_v17  ;;  %v1654_v0 = vld [vmem:[#allocation5 + $0xc4] ss:$16 sps:$4 sm:$0xff]   ;;  %v1656_v1 = vld [vmem:[#allocation5 + $0xcc] ss:$16 sps:$4 sm:$0xff]  }
  0xff   : > { %v340_v20 = vpop.xlane.xlu0 %339  ;;  %v344_v21 = vpop.xlane.xlu1 %343  ;;  %686 = vmatprep.subr.bf16.mxu0 %v1654_v0  ;;  %759 = vmatprep.subr.bf16.mxu1 %v1656_v1  ;;  %v1671_v0 = vld [vmem:[#allocation7 + $0x8] sm:$0xff]  }
 0x100   : > { %v355_v22 = vmul.f32 0.0078125, %v340_v20  ;;  %v370_v23 = vmul.f32 %v2103_v18, %v2103_v18  ;;  %v357_v24 = vmul.f32 0.0078125, %v344_v21  ;;  %v372_v27 = vmul.f32 %v2105_v19, %v2105_v19  ;;  %v1673_v1 = vld [vmem:[#allocation7 + $0x88] sm:$0xff]  }
 0x102   : > { %v2109_v25 = vsub.f32 %v330_v2, %v355_v22  ;;  %378 = vadd.xlane.f32.xlu0 %v370_v23  ;;  %v2111_v26 = vsub.f32 %v332_v3, %v357_v24  ;;  %v1658_v2 = vld [vmem:[#allocation5 + $0xc0] ss:$16 sps:$4 sm:$0xff]   ;;  %v1659_v3 = vld [vmem:[#allocation5 + $0xc8] ss:$16 sps:$4 sm:$0xff]  }
 0x103   : > { %v346_v28 = vpop.xlane.xlu0 %345  ;;  %v348_v29 = vpop.xlane.xlu1 %347  ;;  %687 = vmatpush1.bf16.msra.mxu0 %v1658_v2  ;;  %760 = vmatpush1.bf16.msra.mxu1 %v1659_v3  ;;  %v1674_v2 = vld [vmem:[#allocation7 + $0x50] sm:$0xff]  }
 0x104   : > { %v358_v30 = vmul.f32 0.0078125, %v346_v28  ;;  %v371_v31 = vmul.f32 %v2109_v25, %v2109_v25  ;;  %v359_v32 = vmul.f32 0.0078125, %v348_v29  ;;  %v373_v35 = vmul.f32 %v2111_v26, %v2111_v26  ;;  %v1676_v3 = vld [vmem:[#allocation7 + $0xd0] sm:$0xff]  }
 0x106   : > { %v2117_v33 = vsub.f32 %v333_v4, %v358_v30  ;;  %382 = vadd.xlane.f32.xlu0 %v372_v27  ;;  %380 = vadd.xlane.f32.xlu1 %v371_v31  ;;  %v2119_v34 = vsub.f32 %v334_v5, %v359_v32  ;;  %v1660_v4 = vld [vmem:[#allocation5 + $0xe4] ss:$16 sps:$4 sm:$0xff]   ;;  %v1662_v5 = vld [vmem:[#allocation5 + $0xec] ss:$16 sps:$4 sm:$0xff]  }
 0x107   : > { %v350_v36 = vpop.xlane.xlu0 %349  ;;  %v352_v37 = vpop.xlane.xlu1 %351  ;;  %688 = vmatprep.subr.bf16.mxu0 %v1660_v4  ;;  %761 = vmatprep.subr.bf16.mxu1 %v1662_v5 }
 0x108   : > { %v360_v38 = vmul.f32 0.0078125, %v350_v36  ;;  %v374_v39 = vmul.f32 %v2117_v33, %v2117_v33  ;;  %v361_v40 = vmul.f32 0.0078125, %v352_v37  ;;  %v375_v43 = vmul.f32 %v2119_v34, %v2119_v34 }
 0x10a   : > { %v2125_v41 = vsub.f32 %v335_v6, %v360_v38  ;;  %384 = vadd.xlane.f32.xlu1 %v373_v35  ;;  %386 = vadd.xlane.f32.xlu0 %v374_v39  ;;  %v2127_v42 = vsub.f32 %v336_v7, %v361_v40  ;;  %v1664_v6 = vld [vmem:[#allocation5 + $0xe0] ss:$16 sps:$4 sm:$0xff]   ;;  %v1665_v7 = vld [vmem:[#allocation5 + $0xe8] ss:$16 sps:$4 sm:$0xff]  }
 0x10b   : > { %689 = vmatpush1.bf16.msra.mxu0 %v1664_v6  ;;  %762 = vmatpush1.bf16.msra.mxu1 %v1665_v7  ;;  %v2141_v40 = vld [vmem:[%s2296_s1] ss:$0 sm:$0xff] }
 0x10c   : > { %v376_v44 = vmul.f32 %v2125_v41, %v2125_v41  ;;  %v377_v45 = vmul.f32 %v2127_v42, %v2127_v42  ;;  %1462 = vmatprep.subr.bf16.mxu0 %v1666_v9  ;;  %1502 = vmatprep.subr.bf16.mxu1 %v1668_v10  ;;  %v1675_v9 = vld [vmem:[#allocation7 + $0x10] sm:$0xff]  }
 0x10d   : > { %v1677_v10 = vld [vmem:[#allocation7 + $0x90] sm:$0xff]  }
 0x10e   : > { %388 = vadd.xlane.f32.xlu1 %v375_v43  ;;  %390 = vadd.xlane.f32.xlu0 %v376_v44 }
 0x112   : > { %392 = vadd.xlane.f32.xlu1 %v377_v45 }
 0x18f   : > { %v379_v11 = vpop.xlane.xlu0 %378 }
 0x190   : > { %v394_v12 = vmul.f32 0.0078125, %v379_v11  ;;  %v1678_v11 = vld [vmem:[#allocation7 + $0x58] sm:$0xff]  }
 0x192   : > { %v402_v13 = vadd.f32 1e-05, %v394_v12  ;;  %v1680_v12 = vld [vmem:[#allocation7 + $0xd8] sm:$0xff]  }
 0x193   : > { %v381_v14 = vpop.xlane.xlu1 %380  ;;  %v383_v15 = vpop.xlane.xlu0 %382 }
 0x194   : > { %1698 = vrsqrt.f32 %v402_v13  ;;  %v395_v16 = vmul.f32 0.0078125, %v381_v14  ;;  %v396_v17 = vmul.f32 0.0078125, %v383_v15 }
 0x196   : > { %v403_v20 = vadd.f32 1e-05, %v395_v16  ;;  %v404_v21 = vadd.f32 1e-05, %v396_v17  ;;  %v1679_v16 = vld [vmem:[#allocation7 + $0x18] sm:$0xff]  }
 0x197   : > { %v385_v22 = vpop.xlane.xlu1 %384  ;;  %v387_v23 = vpop.xlane.xlu0 %386  ;;  %v1681_v17 = vld [vmem:[#allocation7 + $0x98] sm:$0xff]  }
 0x198   : > { %1700 = vrsqrt.f32 %v403_v20  ;;  %v397_v24 = vmul.f32 0.0078125, %v385_v22  ;;  %v398_v28 = vmul.f32 0.0078125, %v387_v23  ;;  %v1682_v20 = vld [vmem:[#allocation7 + $0x60] sm:$0xff]  }
 0x199   : > { %1702 = vrsqrt.f32 %v404_v21  ;;  %v1684_v21 = vld [vmem:[#allocation7 + $0xe0] sm:$0xff]  }
 0x19a   : > { %v405_v27 = vadd.f32 1e-05, %v397_v24  ;;  %v406_v32 = vadd.f32 1e-05, %v398_v28  ;;  %v1683_v28 = vld [vmem:[#allocation7 + $0x20] sm:$0xff]  }
 0x19b   : > { %v389_v29 = vpop.xlane.xlu1 %388  ;;  %v391_v36 = vpop.xlane.xlu0 %390 }
 0x19c   : > { %1704 = vrsqrt.f32 %v405_v27  ;;  %v399_v30 = vmul.f32 0.0078125, %v389_v29  ;;  %v400_v44 = vmul.f32 0.0078125, %v391_v36  ;;  %v1685_v29 = vld [vmem:[#allocation7 + $0xa0] sm:$0xff]  }
 0x19e   : > { %v1699_v31 = vpop.eup %1698  ;;  %v407_v35 = vadd.f32 1e-05, %v399_v30  ;;  %v408_v51 = vadd.f32 1e-05, %v400_v44  ;;  %v1688_v30 = vld [vmem:[#allocation7 + $0xe8] sm:$0xff]   ;;  %v1696_v44 = vld [vmem:[#allocation7 + $0xf8] sm:$0xff]  }
 0x19f   : > { %v393_v37 = vpop.xlane.xlu1 %392  ;;  %v418_v38 = vmul.f32 %v1699_v31, %v2103_v18  ;;  %v2148_v18 = vld [vmem:[%s2297_s2] ss:$0 sm:$0xff] }
 0x1a0   : > { %1706 = vrsqrt.f32 %v407_v35  ;;  %v401_v39 = vmul.f32 0.0078125, %v393_v37  ;;  %v1689_v37 = vld [vmem:[#allocation7 + $0xa8] sm:$0xff]  }
 0x1a1   : > { %1708 = vrsqrt.f32 %v406_v32  ;;  %v433_v46 = vmul.f32 %v2141_v40, %v418_v38  ;;  %v1687_v32 = vld [vmem:[#allocation7 + $0x28] sm:$0xff]   ;;  %v1690_v38 = vld [vmem:[#allocation7 + $0x70] sm:$0xff]  }
 0x1a2   : > { %v1701_v43 = vpop.eup %1700  ;;  %v409_v48 = vadd.f32 1e-05, %v401_v39  ;;  %v1692_v39 = vld [vmem:[#allocation7 + $0xf0] sm:$0xff]  }
 0x1a3   : > { %v419_v45 = vmul.f32 %v1701_v43, %v2109_v25  ;;  %v1703_v47 = vpop.eup %1702  ;;  %v448_v52 = vadd.f32 %v2148_v18, %v433_v46  ;;  %v1693_v43 = vld [vmem:[#allocation7 + $0xb0] sm:$0xff]   ;;  %v1697_v46 = vld [vmem:[#allocation7 + $0xb8] sm:$0xff]  }
 0x1a4   : > { %v420_v54 = vmul.f32 %v1703_v47, %v2105_v19  ;;  %1710 = vrsqrt.f32 %v409_v48  ;;  %v494_v47 = vlaneseq }
 0x1a5   : > { %v434_v49 = vmul.f32 %v2141_v40, %v419_v45  ;;  %1712 = vrsqrt.f32 %v408_v51  ;;  %v1695_v45 = vld [vmem:[#allocation7 + $0x38] sm:$0xff]  }
 0x1a6   : > { %v1705_v50 = vpop.eup %1704  ;;  %v435_v62 = vmul.f32 %v2141_v40, %v420_v54  ;;  %v495_v48 = vshrl.u32 %v494_v47, 7 }
 0x1a7   : > { %v449_v53 = vadd.f32 %v2148_v18, %v434_v49  ;;  %v421_v25 = vmul.f32 %v1705_v50, %v2111_v26  ;;  %v492_v50 = vld [vmem:[%s2299_s4] sm:$0xf] }
 0x1a8   : > { %v450_v4 = vadd.f32 %v2148_v18, %v435_v62  ;;  %v504_v49 = vsub.s32 2, %v495_v48  ;;  %v500_v51 = vsub.s32 1, %v495_v48 }
 0x1a9   : > { %v456_v55 = vpack.c.bf16 %v449_v53, %v448_v52  ;;  %v436_v56 = vmul.f32 %v2141_v40, %v421_v25  ;;  %v508_v52 = vsub.s32 3, %v495_v48 }
 0x1aa   : > { %v1707_v59 = vpop.eup %1706  ;;  %v2182_v54 = vrot.slane %v492_v50, %v504_v49  ;;  %v2184_v25 = vrot.slane %v492_v50, %v500_v51 }
 0x1ab   : > { %707 = vmatmul.mubr.bf16.vlgmr.msra.gmra.mrb[0].mxu0 %v456_v55  ;;  %780 = vmatmul.mubr.bf16.vlgmr.msra.gmra.mrb[0].mxu1 %v456_v55  ;;  %v1709_v63 = vpop.eup %1708  ;;  %v451_v19 = vadd.f32 %v2148_v18, %v436_v56  ;;  %v423_v26 = vmul.f32 %v1707_v59, %v2119_v34  ;;  %v2186_v55 = vrot.slane %v492_v50, %v508_v52 }
 0x1ac   : > { %716 = vmatprep.mubr.bf16.mxu0 %v1881_v8  ;;  %789 = vmatprep.mubr.bf16.mxu1 %v1881_v8  ;;  %v422_v5 = vmul.f32 %v1709_v63, %v2117_v33 }
 0x1ad   : > { %1463 = vmatpush3.bf16.msra.mxu0 %v1667_v57  ;;  %1503 = vmatpush3.bf16.msra.mxu1 %v1669_v58  ;;  %v457_v6 = vpack.c.bf16 %v451_v19, %v450_v4  ;;  %v438_v7 = vmul.f32 %v2141_v40, %v423_v26 }
 0x1ae   : > { %1464 = vmatprep.subr.bf16.mxu0 %v1670_v60  ;;  %1504 = vmatprep.subr.bf16.mxu1 %v1672_v61  ;;  %v1711_v34 = vpop.eup %1710  ;;  %v437_v13 = vmul.f32 %v2141_v40, %v422_v5 }
 0x1af   : > { %v1713_v14 = vpop.eup %1712  ;;  %v453_v33 = vadd.f32 %v2148_v18, %v438_v7  ;;  %v425_v15 = vmul.f32 %v1711_v34, %v2127_v42  ;;  %v1686_v42 = vld [vmem:[#allocation7 + $0x68] sm:$0xff]  }
 0x1b0   : > { %v452_v22 = vadd.f32 %v2148_v18, %v437_v13  ;;  %v424_v23 = vmul.f32 %v1713_v14, %v2125_v41 }
 0x1b1   : > { %1465 = vmatpush3.bf16.msra.mxu0 %v1671_v0  ;;  %1505 = vmatpush3.bf16.msra.mxu1 %v1673_v1  ;;  %v440_v27 = vmul.f32 %v2141_v40, %v425_v15 }
 0x1b2   : > { %1466 = vmatprep.subr.bf16.mxu0 %v1674_v2  ;;  %1506 = vmatprep.subr.bf16.mxu1 %v1676_v3  ;;  %v458_v24 = vpack.c.bf16 %v453_v33, %v452_v22  ;;  %v439_v31 = vmul.f32 %v2141_v40, %v424_v23  ;;  %v1691_v40 = vld [vmem:[#allocation7 + $0x30] sm:$0xff]  }
 0x1b3   : > { %717 = vmatmul.mubr.bf16.gmra.mrb[4].mxu0 %v457_v6  ;;  %790 = vmatmul.mubr.bf16.gmra.mrb[4].mxu1 %v457_v6  ;;  %v455_v41 = vadd.f32 %v2148_v18, %v440_v27 }
 0x1b4   : > { %726 = vmatprep.mubr.bf16.mxu0 %v1881_v8  ;;  %799 = vmatprep.mubr.bf16.mxu1 %v1881_v8  ;;  %v454_v35 = vadd.f32 %v2148_v18, %v439_v31  ;;  %v496_v18 = vsub.s32 0, %v495_v48 }
 0x1b5   : > { %1467 = vmatpush3.bf16.msra.mxu0 %v1675_v9  ;;  %1507 = vmatpush3.bf16.msra.mxu1 %v1677_v10 }
 0x1b6   : > { %1468 = vmatprep.subr.bf16.mxu0 %v1678_v11  ;;  %1508 = vmatprep.subr.bf16.mxu1 %v1680_v12  ;;  %v459_v36 = vpack.c.bf16 %v455_v41, %v454_v35  ;;  %v2180_v53 = vrot.slane %v492_v50, %v496_v18 }
 0x1b9   : > { %1469 = vmatpush3.bf16.msra.mxu0 %v1679_v16  ;;  %1509 = vmatpush3.bf16.msra.mxu1 %v1681_v17 }
 0x1ba   : > { %1470 = vmatprep.subr.bf16.mxu0 %v1682_v20  ;;  %1510 = vmatprep.subr.bf16.mxu1 %v1684_v21 }
 0x1bb   : > { %727 = vmatmul.mubr.bf16.gmra.mrb[8].mxu0 %v458_v24  ;;  %800 = vmatmul.mubr.bf16.gmra.mrb[8].mxu1 %v458_v24 }
 0x1bc   : > { %736 = vmatprep.mubr.bf16.mxu0 %v1881_v8  ;;  %809 = vmatprep.mubr.bf16.mxu1 %v1881_v8  ;;  %v1694_v8 = vld [vmem:[#allocation7 + $0x78] sm:$0xff]  }
 0x1bd   : > { %1471 = vmatpush3.bf16.msra.mxu0 %v1683_v28  ;;  %1511 = vmatpush3.bf16.msra.mxu1 %v1685_v29 }
 0x1be   : > { %1472 = vmatprep.subr.bf16.mxu0 %v1686_v42  ;;  %1512 = vmatprep.subr.bf16.mxu1 %v1688_v30 }
 0x1c1   : > { %1473 = vmatpush3.bf16.msra.mxu0 %v1687_v32  ;;  %1513 = vmatpush3.bf16.msra.mxu1 %v1689_v37 }
 0x1c2   : > { %1474 = vmatprep.subr.bf16.mxu0 %v1690_v38  ;;  %1514 = vmatprep.subr.bf16.mxu1 %v1692_v39 }
 0x1c3   : > { %737 = vmatmul.mubr.bf16.gmra.mrb[12].mxu0 %v459_v36  ;;  %810 = vmatmul.mubr.bf16.gmra.mrb[12].mxu1 %v459_v36 }
 0x1c5   : > { %1475 = vmatpush3.bf16.msra.mxu0 %v1691_v40  ;;  %1515 = vmatpush3.bf16.msra.mxu1 %v1693_v43 }
 0x1c6   : > { %1476 = vmatprep.subr.bf16.mxu0 %v1694_v8  ;;  %1516 = vmatprep.subr.bf16.mxu1 %v1696_v44 }
 0x1c9   : > { %1477 = vmatpush3.bf16.msra.mxu0 %v1695_v45  ;;  %1517 = vmatpush3.bf16.msra.mxu1 %v1697_v46 }
 0x27e   : > { %v708_v56 = vpop.f32.mrb[0].mxu0  ;;  %v781_v57 = vpop.f32.mrb[0].mxu1 }
 0x27f   : > { %v709_v58 = vadd.f32 %v708_v56, %v2180_v53  ;;  %v782_v59 = vadd.f32 %v781_v57, %v2182_v54  ;;  %v710_v60 = vpop.f32.mrb[1].mxu0  ;;  %v783_v61 = vpop.f32.mrb[1].mxu1 }
 0x280   : > { %v711_v62 = vadd.f32 %v710_v60, %v2184_v25  ;;  %v784_v63 = vadd.f32 %v783_v61, %v2186_v55  ;;  %v712_v19 = vpop.f32.mrb[2].mxu0  ;;  %v785_v26 = vpop.f32.mrb[2].mxu1 }
 0x281   : > { %v713_v0 = vadd.f32 %v712_v19, %v2180_v53  ;;  %v786_v1 = vadd.f32 %v785_v26, %v2182_v54  ;;  %v714_v2 = vpop.f32.mrb[3].mxu0  ;;  %v787_v3 = vpop.f32.mrb[3].mxu1  ;;  %v820_v6 = vmax.f32 %v709_v58, 0.0  ;;  %v822_v7 = vmax.f32 %v782_v59, 0.0 }
 0x282   : > { %v715_v4 = vadd.f32 %v714_v2, %v2184_v25  ;;  %v788_v5 = vadd.f32 %v787_v3, %v2186_v55  ;;  %v821_v34 = vmax.f32 %v711_v62, 0.0  ;;  %v823_v11 = vmax.f32 %v784_v63, 0.0 }
 0x283   : > { %v824_v9 = vmax.f32 %v713_v0, 0.0  ;;  %v826_v10 = vmax.f32 %v786_v1, 0.0 }
 0x284   : > { %v825_v12 = vmax.f32 %v715_v4, 0.0  ;;  %v827_v13 = vmax.f32 %v788_v5, 0.0 }
 0x285   : > { %v852_v14 = vpack.c.bf16 %v824_v9, %v820_v6  ;;  %v854_v33 = vpack.c.bf16 %v826_v10, %v822_v7 }
 0x286   : > { %v853_v15 = vpack.c.bf16 %v825_v12, %v821_v34  ;;  %v855_v16 = vpack.c.bf16 %v827_v13, %v823_v11  ;;  %v718_v17 = vpop.f32.mrb[4].mxu0  ;;  %v791_v20 = vpop.f32.mrb[4].mxu1 }
 0x287   : > { %v719_v21 = vadd.f32 %v718_v17, %v2180_v53  ;;  %v792_v22 = vadd.f32 %v791_v20, %v2182_v54  ;;  %v720_v23 = vpop.f32.mrb[5].mxu0  ;;  %v793_v24 = vpop.f32.mrb[5].mxu1 }
 0x288   : > { %v721_v27 = vadd.f32 %v720_v23, %v2184_v25  ;;  %v794_v28 = vadd.f32 %v793_v24, %v2186_v55  ;;  %v722_v29 = vpop.f32.mrb[6].mxu0  ;;  %v795_v42 = vpop.f32.mrb[6].mxu1  ;;  %1163 = vmatprep.mubr.bf16.mxu0 %v853_v15  ;;  %1228 = vmatprep.mubr.bf16.mxu1 %v855_v16 }
 0x289   : > { %v723_v30 = vadd.f32 %v722_v29, %v2180_v53  ;;  %v796_v31 = vadd.f32 %v795_v42, %v2182_v54  ;;  %v724_v41 = vpop.f32.mrb[7].mxu0  ;;  %v797_v32 = vpop.f32.mrb[7].mxu1  ;;  %1164 = vmatmul.mubr.bf16.vlgmr.msra.gmra.mrb[16].mxu0 %v852_v14  ;;  %1229 = vmatmul.mubr.bf16.vlgmr.msra.gmra.mrb[16].mxu1 %v854_v33  ;;  %v828_v37 = vmax.f32 %v719_v21, 0.0  ;;  %v830_v38 = vmax.f32 %v792_v22, 0.0 }
 0x28a   : > { %v725_v35 = vadd.f32 %v724_v41, %v2184_v25  ;;  %v798_v36 = vadd.f32 %v797_v32, %v2186_v55  ;;  %v829_v43 = vmax.f32 %v721_v27, 0.0  ;;  %v831_v8 = vmax.f32 %v794_v28, 0.0 }
 0x28b   : > { %v832_v39 = vmax.f32 %v723_v30, 0.0  ;;  %v834_v40 = vmax.f32 %v796_v31, 0.0 }
 0x28c   : > { %v833_v44 = vmax.f32 %v725_v35, 0.0  ;;  %v835_v45 = vmax.f32 %v798_v36, 0.0 }
 0x28d   : > { %v856_v46 = vpack.c.bf16 %v832_v39, %v828_v37  ;;  %v858_v47 = vpack.c.bf16 %v834_v40, %v830_v38 }
 0x28e   : > { %v857_v48 = vpack.c.bf16 %v833_v44, %v829_v43  ;;  %v859_v18 = vpack.c.bf16 %v835_v45, %v831_v8  ;;  %v728_v49 = vpop.f32.mrb[8].mxu0  ;;  %v801_v50 = vpop.f32.mrb[8].mxu1 }
 0x28f   : > { %v729_v51 = vadd.f32 %v728_v49, %v2180_v53  ;;  %v802_v52 = vadd.f32 %v801_v50, %v2182_v54  ;;  %v730_v56 = vpop.f32.mrb[9].mxu0  ;;  %v803_v57 = vpop.f32.mrb[9].mxu1 }
 0x290   : > { %v731_v58 = vadd.f32 %v730_v56, %v2184_v25  ;;  %v804_v59 = vadd.f32 %v803_v57, %v2186_v55  ;;  %v732_v60 = vpop.f32.mrb[10].mxu0  ;;  %v805_v61 = vpop.f32.mrb[10].mxu1  ;;  %1171 = vmatprep.mubr.bf16.mxu0 %v857_v48  ;;  %1236 = vmatprep.mubr.bf16.mxu1 %v859_v18 }
 0x291   : > { %v733_v62 = vadd.f32 %v732_v60, %v2180_v53  ;;  %v806_v63 = vadd.f32 %v805_v61, %v2182_v54  ;;  %v734_v19 = vpop.f32.mrb[11].mxu0  ;;  %v807_v26 = vpop.f32.mrb[11].mxu1  ;;  %1172 = vmatmul.mubr.bf16.gmra.mrb[20].mxu0 %v856_v46  ;;  %1237 = vmatmul.mubr.bf16.gmra.mrb[20].mxu1 %v858_v47  ;;  %v836_v2 = vmax.f32 %v729_v51, 0.0  ;;  %v838_v3 = vmax.f32 %v802_v52, 0.0 }
 0x292   : > { %v735_v0 = vadd.f32 %v734_v19, %v2184_v25  ;;  %v808_v1 = vadd.f32 %v807_v26, %v2186_v55  ;;  %v837_v6 = vmax.f32 %v731_v58, 0.0  ;;  %v839_v7 = vmax.f32 %v804_v59, 0.0 }
 0x293   : > { %v840_v4 = vmax.f32 %v733_v62, 0.0  ;;  %v842_v5 = vmax.f32 %v806_v63, 0.0 }
 0x294   : > { %v841_v9 = vmax.f32 %v735_v0, 0.0  ;;  %v843_v10 = vmax.f32 %v808_v1, 0.0 }
 0x295   : > { %v860_v34 = vpack.c.bf16 %v840_v4, %v836_v2  ;;  %v862_v11 = vpack.c.bf16 %v842_v5, %v838_v3 }
 0x296   : > { %v861_v12 = vpack.c.bf16 %v841_v9, %v837_v6  ;;  %v863_v13 = vpack.c.bf16 %v843_v10, %v839_v7  ;;  %v738_v14 = vpop.f32.mrb[12].mxu0  ;;  %v811_v33 = vpop.f32.mrb[12].mxu1 }
 0x297   : > { %v739_v15 = vadd.f32 %v738_v14, %v2180_v53  ;;  %v812_v16 = vadd.f32 %v811_v33, %v2182_v54  ;;  %v740_v17 = vpop.f32.mrb[13].mxu0  ;;  %v813_v20 = vpop.f32.mrb[13].mxu1 }
 0x298   : > { %v741_v21 = vadd.f32 %v740_v17, %v2184_v25  ;;  %v814_v22 = vadd.f32 %v813_v20, %v2186_v55  ;;  %v742_v23 = vpop.f32.mrb[14].mxu0  ;;  %v815_v24 = vpop.f32.mrb[14].mxu1  ;;  %1179 = vmatprep.mubr.bf16.mxu0 %v861_v12  ;;  %1244 = vmatprep.mubr.bf16.mxu1 %v863_v13 }
 0x299   : > { %v743_v27 = vadd.f32 %v742_v23, %v2180_v53  ;;  %v816_v28 = vadd.f32 %v815_v24, %v2182_v54  ;;  %v744_v29 = vpop.f32.mrb[15].mxu0  ;;  %v817_v42 = vpop.f32.mrb[15].mxu1  ;;  %1180 = vmatmul.mubr.bf16.gmra.mrb[24].mxu0 %v860_v34  ;;  %1245 = vmatmul.mubr.bf16.gmra.mrb[24].mxu1 %v862_v11  ;;  %v844_v41 = vmax.f32 %v739_v15, 0.0  ;;  %v846_v32 = vmax.f32 %v812_v16, 0.0 }
 0x29a   : > { %v745_v30 = vadd.f32 %v744_v29, %v2184_v25  ;;  %v818_v31 = vadd.f32 %v817_v42, %v2186_v55  ;;  %v845_v37 = vmax.f32 %v741_v21, 0.0  ;;  %v847_v38 = vmax.f32 %v814_v22, 0.0  ;;  %v2223_v55 = vld [vmem:[%s2301_s6] ss:$0 sm:$0xff] }
 0x29b   : > { %v848_v35 = vmax.f32 %v743_v27, 0.0  ;;  %v850_v36 = vmax.f32 %v816_v28, 0.0 }
 0x29c   : > { %v849_v39 = vmax.f32 %v745_v30, 0.0  ;;  %v851_v40 = vmax.f32 %v818_v31, 0.0 }
 0x29d   : > { %v864_v43 = vpack.c.bf16 %v848_v35, %v844_v41  ;;  %v866_v53 = vpack.c.bf16 %v850_v36, %v846_v32 }
 0x29e   : > { %v865_v8 = vpack.c.bf16 %v849_v39, %v845_v37  ;;  %v867_v54 = vpack.c.bf16 %v851_v40, %v847_v38 }
 0x2a0   : > { %1187 = vmatprep.mubr.bf16.mxu0 %v865_v8  ;;  %1252 = vmatprep.mubr.bf16.mxu1 %v867_v54 }
 0x2a1   : > { %1188 = vmatmul.mubr.bf16.gmra.mrb[28].mxu0 %v864_v43  ;;  %1253 = vmatmul.mubr.bf16.gmra.mrb[28].mxu1 %v866_v53 }
 0x35c   : > { %v1478_v44 = vpop.f32.mrb[16].mxu0  ;;  %v1518_v25 = vpop.f32.mrb[16].mxu1 }
 0x35d   : > { %v1479_v45 = vpop.f32.mrb[17].mxu0  ;;  %v1519_v46 = vpop.f32.mrb[17].mxu1 }
 0x35e   : > { %v1480_v47 = vadd.f32 %v1479_v45, %v1478_v44  ;;  %v1520_v48 = vadd.f32 %v1519_v46, %v1518_v25  ;;  %v1481_v18 = vpop.f32.mrb[18].mxu0  ;;  %v1521_v49 = vpop.f32.mrb[18].mxu1 }
 0x35f   : > { %v1482_v50 = vpop.f32.mrb[19].mxu0  ;;  %v1522_v51 = vpop.f32.mrb[19].mxu1 }
 0x360   : > { %v1166_v52 = vadd.f32 %v1480_v47, %v2223_v55  ;;  %v1483_v56 = vadd.f32 %v1482_v50, %v1481_v18  ;;  %v1523_v57 = vadd.f32 %v1522_v51, %v1521_v49 }
 0x362   : > { %v1231_v58 = vadd.f32 %v1520_v48, %v1166_v52  ;;  %v1169_v59 = vadd.f32 %v1483_v56, %v2223_v55 }
 0x364   : > { %1261 = vst [vmem:[%s2229_s15] sm:$0xff] %v1231_v58  ;;  %v1234_v60 = vadd.f32 %v1523_v57, %v1169_v59  ;;  %v1484_v61 = vpop.f32.mrb[20].mxu0  ;;  %v1524_v62 = vpop.f32.mrb[20].mxu1 }
 0x365   : > { %v1485_v63 = vpop.f32.mrb[21].mxu0  ;;  %v1525_v19 = vpop.f32.mrb[21].mxu1 }
 0x366   : > { %1262 = vst [vmem:[%s2229_s15 + $0x8] sm:$0xff] %v1234_v60  ;;  %v1486_v26 = vadd.f32 %v1485_v63, %v1484_v61  ;;  %v1526_v0 = vadd.f32 %v1525_v19, %v1524_v62  ;;  %v1487_v1 = vpop.f32.mrb[22].mxu0  ;;  %v1527_v2 = vpop.f32.mrb[22].mxu1 }
 0x367   : > { %v1488_v3 = vpop.f32.mrb[23].mxu0  ;;  %v1528_v4 = vpop.f32.mrb[23].mxu1 }
 0x368   : > { %v1174_v5 = vadd.f32 %v1486_v26, %v2223_v55  ;;  %v1489_v6 = vadd.f32 %v1488_v3, %v1487_v1  ;;  %v1529_v7 = vadd.f32 %v1528_v4, %v1527_v2 }
 0x36a   : > { %v1239_v9 = vadd.f32 %v1526_v0, %v1174_v5  ;;  %v1177_v10 = vadd.f32 %v1489_v6, %v2223_v55 }
 0x36c   : > { %1263 = vst [vmem:[%s2229_s15 + $0x10] sm:$0xff] %v1239_v9  ;;  %v1242_v34 = vadd.f32 %v1529_v7, %v1177_v10  ;;  %v1490_v11 = vpop.f32.mrb[24].mxu0  ;;  %v1530_v12 = vpop.f32.mrb[24].mxu1 }
 0x36d   : > { %v1491_v13 = vpop.f32.mrb[25].mxu0  ;;  %v1531_v14 = vpop.f32.mrb[25].mxu1 }
 0x36e   : > { %1264 = vst [vmem:[%s2229_s15 + $0x18] sm:$0xff] %v1242_v34  ;;  %v1492_v33 = vadd.f32 %v1491_v13, %v1490_v11  ;;  %v1532_v15 = vadd.f32 %v1531_v14, %v1530_v12  ;;  %v1493_v16 = vpop.f32.mrb[26].mxu0  ;;  %v1533_v17 = vpop.f32.mrb[26].mxu1 }
 0x36f   : > { %v1494_v20 = vpop.f32.mrb[27].mxu0  ;;  %v1534_v21 = vpop.f32.mrb[27].mxu1 }
 0x370   : > { %v1182_v22 = vadd.f32 %v1492_v33, %v2223_v55  ;;  %v1495_v23 = vadd.f32 %v1494_v20, %v1493_v16  ;;  %v1535_v24 = vadd.f32 %v1534_v21, %v1533_v17 }
 0x372   : > { %v1247_v27 = vadd.f32 %v1532_v15, %v1182_v22  ;;  %v1185_v28 = vadd.f32 %v1495_v23, %v2223_v55 }
 0x374   : > { %1265 = vst [vmem:[%s2229_s15 + $0x20] sm:$0xff] %v1247_v27  ;;  %v1250_v29 = vadd.f32 %v1535_v24, %v1185_v28  ;;  %v1496_v42 = vpop.f32.mrb[28].mxu0  ;;  %v1536_v30 = vpop.f32.mrb[28].mxu1 }
 0x375   : > { %v1497_v31 = vpop.f32.mrb[29].mxu0  ;;  %v1537_v41 = vpop.f32.mrb[29].mxu1 }
 0x376   : > { %1266 = vst [vmem:[%s2229_s15 + $0x28] sm:$0xff] %v1250_v29  ;;  %v1498_v32 = vadd.f32 %v1497_v31, %v1496_v42  ;;  %v1538_v35 = vadd.f32 %v1537_v41, %v1536_v30  ;;  %v1499_v36 = vpop.f32.mrb[30].mxu0  ;;  %v1539_v37 = vpop.f32.mrb[30].mxu1 }
 0x377   : > { %v1500_v38 = vpop.f32.mrb[31].mxu0  ;;  %v1540_v39 = vpop.f32.mrb[31].mxu1 }
 0x378   : > { %v1190_v40 = vadd.f32 %v1498_v32, %v2223_v55  ;;  %v1501_v43 = vadd.f32 %v1500_v38, %v1499_v36  ;;  %v1541_v53 = vadd.f32 %v1540_v39, %v1539_v37 }
 0x37a   : > { %v1255_v8 = vadd.f32 %v1538_v35, %v1190_v40  ;;  %v1193_v54 = vadd.f32 %v1501_v43, %v2223_v55 }
 0x37c   : > { %1267 = vst [vmem:[%s2229_s15 + $0x30] sm:$0xff] %v1255_v8  ;;  %v1258_v44 = vadd.f32 %v1541_v53, %v1193_v54 }
 0x37e   : > { %1268 = vst [vmem:[%s2229_s15 + $0x38] sm:$0xff] %v1258_v44 }
 0x37f   : > { %1813 = shalt.err (!%p1810_p7)
}
 0x380   : > { %s1814_s10 = scalar_lea.hbm %s2250_s30, 1024  ;;  %s1818_s15 = scalar_lea.hbm %s2302_s7, 4096 }
 0x381   : > { %p1815_p9 = scmp.ne.s32.totalorder %s2250_s30, %s1814_s10  ;;  %p1819_p5 = scmp.lt.u32.totalorder %s2250_s30, %s2302_s7 }
 0x382   : > { %p1820_p10 = scmp.lt.u32.totalorder %s1818_s15, %s1814_s10  ;;  %p1822_p1 = scmp.lt.u32.totalorder %s1814_s10, %s2250_s30 }
 0x383   : > { %p1816_p12 = pnand %p1815_p9, %p2040_p6 }
 0x384   : > { %p1821_p11 = por %p1820_p10, %p1819_p5 }
 0x385   : > { %p1817_p0 = pneg %p1816_p12 }
 0x386   : > { %p1823_p2 = por %p1822_p1, %p1821_p11 }
 0x388   : > { %p1824_p4 = pnand %p1823_p2, %p1817_p0 }
 0x38a   : > { %1827 = shalt.err (!%p1824_p4)
}
 0x38b   : > { %s1883_s22 = smov 128   ;;  %s1884_s11 = smov 8  }
 0x38c   : > { %1552 = dma.vmem_to_hbm [thread:$0]  (%p2040_p6), %s2244_s14, 1024, %s2250_s30, %s1270_s9, %s1883_s22, %s1883_s22, %s1884_s11  }
 0x38d PF: > { %p1574_p8 = scmp.ge.s32.totalorder %s1870_s27, 2  ;;  %s1298_s28 = sand.u32 1, %s1858_s24  }
 0x38e   : > { %p2317_p13 = scmp.ne.s32.totalorder %s2307_s8, 0  ;;  %s1299_s23 = scalar_lea.sflag [#allocation4], %s1298_s28 }
 0x390   : > { %p1566_p3 = pnand %p1574_p8, %p2317_p13 }
 0x392   : > { %1853 = dma.done.wait (!%p1566_p3), %s1299_s23, 1024  }
 0x393   : > { %1855 = vsyncadd (!%p1566_p3), %s1299_s23, 4294966272  ;;  %p21_p7 = scmp.ge.s32.totalorder %s2027_s13, 6   ;;  %s2318_s24 = smov %s1862_s25 }
 0x394   : > { %s2319_s25 = smov %s1866_s26  ;;  %s2320_s26 = smov %s2036_s17 }
 0x395   : > { %s2321_s27 = smov %s2027_s13  ;;  %23 = sbr.rel (!%p21_p7) target bundleno = 6 (0x6), region = 101 }
 0x39c   :  { %1304 = vsyncpa [#allocation3], 1 }
 0x39d   :  { %1306 = vsyncpa [#allocation3 + $0x1], 1 }
 0x39e   :  { %1307 = vsyncpa [#allocation6], 1 }
 0x39f   :  { %1308 = vsyncpa [#allocation4], 1 }
 0x3a0   :  { %1310 = vsyncpa [#allocation4 + $0x1], 1 }

</bundles_post_ra>
